<compile_context>
chip_gen: v5e
topology: v5e:2x2
jax: 0.10.0
libtpu: 0.0.40
codegen_flags: <defaults>
</compile_context>

<pallas_src>
import jax
import jax.numpy as jnp
from jax.experimental import pallas as pl
from jax.experimental.pallas import tpu as pltpu

HIDDEN_LAYERS = [256, 256, 256]


def _round_up(x, m):
    return (x + m - 1) // m * m


def _mlp_kernel(x_ref,
                w1_ref, b1_ref,
                w2_ref, b2_ref,
                w3_ref, b3_ref,
                w4_ref, b4_ref,
                o_ref):
    """Fused 4-layer MLP for one batch tile. Weights resident in VMEM (bf16)."""
    # Layer 1: bf16 x bf16 -> f32 accumulate, bias/ReLU in f32.
    h = jnp.dot(x_ref[...], w1_ref[...],
                preferred_element_type=jnp.float32) + b1_ref[...]
    h = jnp.maximum(h, 0.0)                      # ReLU (dropout == identity)

    h = jnp.dot(h.astype(jnp.bfloat16), w2_ref[...],
                preferred_element_type=jnp.float32) + b2_ref[...]
    h = jnp.maximum(h, 0.0)

    h = jnp.dot(h.astype(jnp.bfloat16), w3_ref[...],
                preferred_element_type=jnp.float32) + b3_ref[...]
    h = jnp.maximum(h, 0.0)

    out = jnp.dot(h.astype(jnp.bfloat16), w4_ref[...],
                  preferred_element_type=jnp.float32) + b4_ref[...]
    o_ref[...] = out.astype(o_ref.dtype)


def mlp_forward(x, params, *, batch_tile=256, training=False):
    """Run the fused MLP Pallas kernel.

    x:       [B, num_inputs] float32
    params:  list of (W, b): W float32 [in, out] (PyTorch weight transposed),
             b float32 [1, out].
    """
    if training:
        # TODO(synk): training-mode dropout not implemented; eval semantics only.
        raise NotImplementedError("mlp_forward implements eval() semantics only")

    B, num_inputs = x.shape
    num_outputs = params[-1][0].shape[1]

    # --- choose batch tile -------------------------------------------------
    B8 = _round_up(B, 8)
    tb = _round_up(min(batch_tile, B8), 8)
    # Prefer >=2 parallel grid steps so v7x's two TensorCores both get work.
    if pl.cdiv(B8, tb) < 2 and B8 >= 16:
        tb = _round_up(pl.cdiv(B8, 2), 8)
    B_pad = _round_up(B, tb)
    grid = B_pad // tb

    # --- prepare operands (bf16 weights, f32 biases, lane-dense output) ----
    ws = [w.astype(jnp.bfloat16) for (w, _) in params]
    bs = [b.astype(jnp.float32) for (_, b) in params]
    out_pad = _round_up(num_outputs, 128)
    if out_pad != num_outputs:
        ws[-1] = jnp.pad(ws[-1], ((0, 0), (0, out_pad - num_outputs)))
        bs[-1] = jnp.pad(bs[-1], ((0, 0), (0, out_pad - num_outputs)))

    xb = x.astype(jnp.bfloat16)
    if B_pad != B:
        xb = jnp.pad(xb, ((0, B_pad - B), (0, 0)))

    # --- specs --------------------------------------------------------------
    def full_spec(arr):
        # Whole weight/bias as one block, same block every grid step.
        return pl.BlockSpec(arr.shape, lambda i: (0, 0))

    in_specs = [pl.BlockSpec((tb, num_inputs), lambda i: (i, 0))]
    flat_params = []
    for w, b in zip(ws, bs):
        in_specs.append(full_spec(w))
        in_specs.append(full_spec(b))
        flat_params.extend([w, b])

    out_specs = pl.BlockSpec((tb, out_pad), lambda i: (i, 0))

    out_padded = pl.pallas_call(
        _mlp_kernel,
        out_shape=jax.ShapeDtypeStruct((B_pad, out_pad), jnp.float32),
        grid_spec=pltpu.PrefetchScalarGridSpec(
            num_scalar_prefetch=0,
            grid=(grid,),
            in_specs=in_specs,
            out_specs=out_specs,
        ),
        compiler_params=pltpu.CompilerParams(
            dimension_semantics=("parallel",)),
    )(xb, *flat_params)

    return out_padded[:B, :num_outputs]


def init_mlp_params(key, num_inputs, num_outputs):
    """nn.Linear default init: U(-1/sqrt(fan_in), +1/sqrt(fan_in)).

    Returns f32 weights already transposed to [in, out] and biases as [1, out].
    """
    sizes = [num_inputs] + HIDDEN_LAYERS + [num_outputs]
    params = []
    for i in range(len(sizes) - 1):
        fan_in, fan_out = sizes[i], sizes[i + 1]
        key, kw, kb = jax.random.split(key, 3)
        bound = 1.0 / jnp.sqrt(jnp.float32(fan_in))
        w_pt = jax.random.uniform(kw, (fan_out, fan_in), jnp.float32, -bound, bound)
        b = jax.random.uniform(kb, (fan_out,), jnp.float32, -bound, bound)
        params.append((w_pt.T, b.reshape(1, fan_out)))
    return params


def mlp_reference(x, params):
    """Pure-JAX reference mirroring the kernel's bf16-input / f32-accumulate math."""
    h = x.astype(jnp.bfloat16)
    n = len(params)
    for i, (w, b) in enumerate(params):
        h = jnp.dot(h, w.astype(jnp.bfloat16),
                    preferred_element_type=jnp.float32) + b
        if i < n - 1:
            h = jnp.maximum(h, 0.0).astype(jnp.bfloat16)
    return h


if __name__ == "__main__":
    key = jax.random.PRNGKey(0)
    k_x, k_x2, k_p = jax.random.split(key, 3)

    num_inputs = 32
    num_outputs = 16
    params = init_mlp_params(k_p, num_inputs, num_outputs)

    # Main case: batch large enough to exercise a multi-step parallel grid.
    batch = 256
    x = jax.random.normal(k_x, (batch, num_inputs), jnp.float32)
    out = jax.block_until_ready(mlp_forward(x, params, batch_tile=256))
    ref = mlp_reference(x, params)
    assert out.shape == (batch, num_outputs), out.shape
    assert jnp.allclose(out, ref, atol=2e-2, rtol=2e-2), "mismatch vs reference (B=256)"

    # Ragged batch: exercises batch padding (no divisibility requirement).
    batch2 = 10
    x2 = jax.random.normal(k_x2, (batch2, num_inputs), jnp.float32)
    out2 = jax.block_until_ready(mlp_forward(x2, params, batch_tile=256))
    ref2 = mlp_reference(x2, params)
    assert out2.shape == (batch2, num_outputs), out2.shape
    assert jnp.allclose(out2, ref2, atol=2e-2, rtol=2e-2), "mismatch vs reference (B=10)"

    print("KERNEL_OK")
</pallas_src>

<mosaic_0001>
module attributes {stable_mosaic.version = 11 : i64} {
  func.func @_mlp_kernel(%arg0: i32, %arg1: memref<128x32xbf16, #tpu.memory_space<vmem>>, %arg2: memref<32x256xbf16, #tpu.memory_space<vmem>>, %arg3: memref<1x256xf32, #tpu.memory_space<vmem>>, %arg4: memref<256x256xbf16, #tpu.memory_space<vmem>>, %arg5: memref<1x256xf32, #tpu.memory_space<vmem>>, %arg6: memref<256x256xbf16, #tpu.memory_space<vmem>>, %arg7: memref<1x256xf32, #tpu.memory_space<vmem>>, %arg8: memref<256x128xbf16, #tpu.memory_space<vmem>>, %arg9: memref<1x128xf32, #tpu.memory_space<vmem>>, %arg10: memref<128x128xf32, #tpu.memory_space<vmem>>) attributes {dimension_semantics = [#tpu.dimension_semantics<parallel>], iteration_bounds = array<i64: 2>, scalar_prefetch = 0 : i64, scratch_operands = 0 : i64, tpu.core_type = #tpu.core_type<tc>, window_params = [{transform_indices = @transform_0, window_bounds = array<i64: 128, 32>}, {pipeline_mode = #tpu.pipeline_mode<synchronous>, transform_indices = @transform_1, window_bounds = array<i64: 32, 256>}, {pipeline_mode = #tpu.pipeline_mode<synchronous>, transform_indices = @transform_2, window_bounds = array<i64: 1, 256>}, {pipeline_mode = #tpu.pipeline_mode<synchronous>, transform_indices = @transform_3, window_bounds = array<i64: 256, 256>}, {pipeline_mode = #tpu.pipeline_mode<synchronous>, transform_indices = @transform_4, window_bounds = array<i64: 1, 256>}, {pipeline_mode = #tpu.pipeline_mode<synchronous>, transform_indices = @transform_5, window_bounds = array<i64: 256, 256>}, {pipeline_mode = #tpu.pipeline_mode<synchronous>, transform_indices = @transform_6, window_bounds = array<i64: 1, 256>}, {pipeline_mode = #tpu.pipeline_mode<synchronous>, transform_indices = @transform_7, window_bounds = array<i64: 256, 128>}, {pipeline_mode = #tpu.pipeline_mode<synchronous>, transform_indices = @transform_8, window_bounds = array<i64: 1, 128>}, {transform_indices = @transform_9, window_bounds = array<i64: 128, 128>}]} {
    %c0 = arith.constant 0 : index
    %c0_0 = arith.constant 0 : index
    %0 = vector.load %arg1[%c0, %c0_0] : memref<128x32xbf16, #tpu.memory_space<vmem>>, vector<128x32xbf16>
    %c0_1 = arith.constant 0 : index
    %c0_2 = arith.constant 0 : index
    %1 = vector.load %arg2[%c0_1, %c0_2] : memref<32x256xbf16, #tpu.memory_space<vmem>>, vector<32x256xbf16>
    %cst = arith.constant dense<0.000000e+00> : vector<128x256xf32>
    %2 = tpu.matmul %0, %1, %cst {dimension_numbers = #tpu.dot_dimension_numbers<[1], [0], [0], [1], [0, 0, 1, 1], [], []>} : vector<128x32xbf16>, vector<32x256xbf16>, vector<128x256xf32> -> vector<128x256xf32>
    %c0_3 = arith.constant 0 : index
    %c0_4 = arith.constant 0 : index
    %3 = vector.load %arg3[%c0_3, %c0_4] : memref<1x256xf32, #tpu.memory_space<vmem>>, vector<1x256xf32>
    %4 = vector.broadcast %3 : vector<1x256xf32> to vector<128x256xf32>
    %5 = arith.addf %2, %4 : vector<128x256xf32>
    %cst_5 = arith.constant 0.000000e+00 : f32
    %6 = vector.broadcast %cst_5 : f32 to vector<128x256xf32>
    %7 = arith.maximumf %5, %6 : vector<128x256xf32>
    %8 = arith.truncf %7 : vector<128x256xf32> to vector<128x256xbf16>
    %c0_6 = arith.constant 0 : index
    %c0_7 = arith.constant 0 : index
    %9 = vector.load %arg4[%c0_6, %c0_7] : memref<256x256xbf16, #tpu.memory_space<vmem>>, vector<256x256xbf16>
    %cst_8 = arith.constant dense<0.000000e+00> : vector<128x256xf32>
    %10 = tpu.matmul %8, %9, %cst_8 {dimension_numbers = #tpu.dot_dimension_numbers<[1], [0], [0], [1], [0, 0, 1, 1], [], []>} : vector<128x256xbf16>, vector<256x256xbf16>, vector<128x256xf32> -> vector<128x256xf32>
    %c0_9 = arith.constant 0 : index
    %c0_10 = arith.constant 0 : index
    %11 = vector.load %arg5[%c0_9, %c0_10] : memref<1x256xf32, #tpu.memory_space<vmem>>, vector<1x256xf32>
    %12 = vector.broadcast %11 : vector<1x256xf32> to vector<128x256xf32>
    %13 = arith.addf %10, %12 : vector<128x256xf32>
    %cst_11 = arith.constant 0.000000e+00 : f32
    %14 = vector.broadcast %cst_11 : f32 to vector<128x256xf32>
    %15 = arith.maximumf %13, %14 : vector<128x256xf32>
    %16 = arith.truncf %15 : vector<128x256xf32> to vector<128x256xbf16>
    %c0_12 = arith.constant 0 : index
    %c0_13 = arith.constant 0 : index
    %17 = vector.load %arg6[%c0_12, %c0_13] : memref<256x256xbf16, #tpu.memory_space<vmem>>, vector<256x256xbf16>
    %cst_14 = arith.constant dense<0.000000e+00> : vector<128x256xf32>
    %18 = tpu.matmul %16, %17, %cst_14 {dimension_numbers = #tpu.dot_dimension_numbers<[1], [0], [0], [1], [0, 0, 1, 1], [], []>} : vector<128x256xbf16>, vector<256x256xbf16>, vector<128x256xf32> -> vector<128x256xf32>
    %c0_15 = arith.constant 0 : index
    %c0_16 = arith.constant 0 : index
    %19 = vector.load %arg7[%c0_15, %c0_16] : memref<1x256xf32, #tpu.memory_space<vmem>>, vector<1x256xf32>
    %20 = vector.broadcast %19 : vector<1x256xf32> to vector<128x256xf32>
    %21 = arith.addf %18, %20 : vector<128x256xf32>
    %cst_17 = arith.constant 0.000000e+00 : f32
    %22 = vector.broadcast %cst_17 : f32 to vector<128x256xf32>
    %23 = arith.maximumf %21, %22 : vector<128x256xf32>
    %24 = arith.truncf %23 : vector<128x256xf32> to vector<128x256xbf16>
    %c0_18 = arith.constant 0 : index
    %c0_19 = arith.constant 0 : index
    %25 = vector.load %arg8[%c0_18, %c0_19] : memref<256x128xbf16, #tpu.memory_space<vmem>>, vector<256x128xbf16>
    %cst_20 = arith.constant dense<0.000000e+00> : vector<128x128xf32>
    %26 = tpu.matmul %24, %25, %cst_20 {dimension_numbers = #tpu.dot_dimension_numbers<[1], [0], [0], [1], [0, 0, 1, 1], [], []>} : vector<128x256xbf16>, vector<256x128xbf16>, vector<128x128xf32> -> vector<128x128xf32>
    %c0_21 = arith.constant 0 : index
    %c0_22 = arith.constant 0 : index
    %27 = vector.load %arg9[%c0_21, %c0_22] : memref<1x128xf32, #tpu.memory_space<vmem>>, vector<1x128xf32>
    %28 = vector.broadcast %27 : vector<1x128xf32> to vector<128x128xf32>
    %29 = arith.addf %26, %28 : vector<128x128xf32>
    %c0_23 = arith.constant 0 : index
    %c0_24 = arith.constant 0 : index
    %30 = vector.load %arg10[%c0_23, %c0_24] : memref<128x128xf32, #tpu.memory_space<vmem>>, vector<128x128xf32>
    tpu.vector_store %arg10[%c0_23, %c0_24], %29 {strides = array<i32>} : memref<128x128xf32, #tpu.memory_space<vmem>>, vector<128x128xf32>,
    return
  }
  func.func @transform_0(%arg0: i32) -> (i32, i32) {
    %c0_i32 = arith.constant 0 : i32
    %c0_i32_0 = arith.constant 0 : i32
    return %arg0, %c0_i32 : i32, i32
  }
  func.func @transform_1(%arg0: i32) -> (i32, i32) {
    %c0_i32 = arith.constant 0 : i32
    %c0_i32_0 = arith.constant 0 : i32
    %c0_i32_1 = arith.constant 0 : i32
    return %c0_i32, %c0_i32_0 : i32, i32
  }
  func.func @transform_2(%arg0: i32) -> (i32, i32) {
    %c0_i32 = arith.constant 0 : i32
    %c0_i32_0 = arith.constant 0 : i32
    %c0_i32_1 = arith.constant 0 : i32
    return %c0_i32, %c0_i32_0 : i32, i32
  }
  func.func @transform_3(%arg0: i32) -> (i32, i32) {
    %c0_i32 = arith.constant 0 : i32
    %c0_i32_0 = arith.constant 0 : i32
    %c0_i32_1 = arith.constant 0 : i32
    return %c0_i32, %c0_i32_0 : i32, i32
  }
  func.func @transform_4(%arg0: i32) -> (i32, i32) {
    %c0_i32 = arith.constant 0 : i32
    %c0_i32_0 = arith.constant 0 : i32
    %c0_i32_1 = arith.constant 0 : i32
    return %c0_i32, %c0_i32_0 : i32, i32
  }
  func.func @transform_5(%arg0: i32) -> (i32, i32) {
    %c0_i32 = arith.constant 0 : i32
    %c0_i32_0 = arith.constant 0 : i32
    %c0_i32_1 = arith.constant 0 : i32
    return %c0_i32, %c0_i32_0 : i32, i32
  }
  func.func @transform_6(%arg0: i32) -> (i32, i32) {
    %c0_i32 = arith.constant 0 : i32
    %c0_i32_0 = arith.constant 0 : i32
    %c0_i32_1 = arith.constant 0 : i32
    return %c0_i32, %c0_i32_0 : i32, i32
  }
  func.func @transform_7(%arg0: i32) -> (i32, i32) {
    %c0_i32 = arith.constant 0 : i32
    %c0_i32_0 = arith.constant 0 : i32
    %c0_i32_1 = arith.constant 0 : i32
    return %c0_i32, %c0_i32_0 : i32, i32
  }
  func.func @transform_8(%arg0: i32) -> (i32, i32) {
    %c0_i32 = arith.constant 0 : i32
    %c0_i32_0 = arith.constant 0 : i32
    %c0_i32_1 = arith.constant 0 : i32
    return %c0_i32, %c0_i32_0 : i32, i32
  }
  func.func @transform_9(%arg0: i32) -> (i32, i32) {
    %c0_i32 = arith.constant 0 : i32
    %c0_i32_0 = arith.constant 0 : i32
    return %arg0, %c0_i32 : i32, i32
  }
}

</mosaic_0001>

<bundles_post_ra>
// kernel: tpu_custom_call.1
= control target key start
LH: loop header
LB: loop body
LE: loop exit
PB: predicated region body
PF: predicated region fallthrough
CT: control target
= control target key end

     0   :  { %14 = vsyncpa [#allocation3], 0  ;;  %s2970_s0 = inlined_call_operand.vmem [shape: bf16[256,32], index: 0, kind: input, shape index: {}]   ;;  %s2971_s1 = inlined_call_operand.vmem [shape: bf16[32,256], index: 1, kind: input, shape index: {}]   ;;  %s2972_s2 = inlined_call_operand.vmem [shape: f32[1,256], index: 2, kind: input, shape index: {}]   ;;  %s2973_s3 = inlined_call_operand.hbm [shape: bf16[256,256], index: 3, kind: input, shape index: {}]   ;;  %s2974_s4 = inlined_call_operand.vmem [shape: f32[1,256], index: 4, kind: input, shape index: {}]   ;;  %s2975_s5 = inlined_call_operand.hbm [shape: bf16[256,256], index: 5, kind: input, shape index: {}]   ;;  %s2976_s6 = inlined_call_operand.vmem [shape: f32[1,256], index: 6, kind: input, shape index: {}]   ;;  %s2977_s7 = inlined_call_operand.vmem [shape: bf16[256,128], index: 7, kind: input, shape index: {}]   ;;  %s2978_s8 = inlined_call_operand.vmem [shape: f32[1,128], index: 8, kind: input, shape index: {}]   ;;  %s2979_s9 = inlined_call_operand.hbm [shape: f32[256,128], index: 9, kind: output, shape index: {}]  }
   0x1   :  { %15 = vsyncpa [#allocation6], 0 }
   0x2   :  { %16 = vsyncpa [#allocation4], 0 }
   0x3   :  { %18 = vsyncpa [#allocation4 + $0x1], 0  ;;  %s2602_s30 = smov 0   ;;  %s2604_s10 = smov 0  }
   0x4   :  { %s2606_s11 = smov 0   ;;  %s2608_s12 = smov 0  }
   0x5 LB: > { %s2623_s13 = sadd.s32 4294967295, %s2544_s12   ;;  %s1856_s14 = sadd.s32 4294967294, %s2544_s12   ;;  %s2544_s12 = sphi %s2608_s12, %s2986_s12   ;;  %s2540_s11 = sphi %s2606_s11, %s2985_s11   ;;  %s2536_s10 = sphi %s2604_s10, %s2984_s10   ;;  %s2532_s30 = sphi %s2602_s30, %s2983_s30  }
   0x6   : > { %s2627_s15 = sadd.s32 1, %s2544_s12   ;;  %s225_s16 = sadd.s32 1, %s2540_s11 }
   0x7   : > { %s222_s17 = ssub.s32 %s2544_s12, %s2627_s15  ;;  %p235_p0 = scmp.ne.s32.totalorder %s2540_s11, %s2536_s10 }
   0x8   : > { %p223_p1 = scmp.eq.s32.totalorder %s222_s17, 0  ;;  %p236_p2 = scmp.eq.s32.totalorder %s2623_s13, 1 }
   0x9   : > { %p241_p3 = scmp.ne.s32.totalorder %s2536_s10, %s2532_s30  ;;  %p242_p4 = scmp.eq.s32.totalorder %s1856_s14, 1 }
   0xa   : > { %s2638_s18 = scalar_select %p223_p1, %s2540_s11, %s225_s16  }
   0xb   : > { %p2640_p5 = por %p236_p2, %p235_p0  ;;  %p2644_p6 = por %p242_p4, %p241_p3 }
   0xc   : > { %p1857_p7 = scmp.ge.s32.totalorder %s2544_s12, 1  ;;  %p249_p8 = scmp.lt.s32.totalorder %s2544_s12, 3 }
   0xd   : > { %p2370_p9 = scmp.eq.s32.totalorder %s2623_s13, 0  ;;  %s266_s24 = sshll.u32 %s2973_s3, 4  ;;  %s267_s24 = int_to_ptr.hbm [resolvable:$true] %s266_s24 }
   0xe   : > { %p2651_p10 = pnand %p1857_p7, %p249_p8  ;;  %s2546_s25 = smov [#allocation2]  }
   0xf   : > { %s268_s26 = sshll.u32 %s2546_s25, 4  ;;  %s283_s29 = sshll.u32 %s2975_s5, 4  ;;  %s269_s26 = int_to_ptr.vmem [resolvable:$true] %s268_s26  ;;  %s284_s29 = int_to_ptr.hbm [resolvable:$true] %s283_s29 }
  0x10   : > { %p2359_p11 = pneg %p2651_p10  ;;  %s2547_s14 = smov 128  }
  0x11   : > { %s2548_s16 = smov 8   ;;  %s2549_s17 = smov [#allocation5]  }
  0x12   : > { %p2360_p12 = pnand %p2370_p9, %p2359_p11  ;;  %s285_s22 = sshll.u32 %s2549_s17, 4  ;;  %s286_s22 = int_to_ptr.vmem [resolvable:$true] %s285_s22 }
  0x13   : > { %319 = sbr.rel (%p2651_p10) target bundleno = 734 (0x2de), region = 56 }
  0x14   : > { %2362 = dma.hbm_to_vmem [thread:$0]  (!%p2360_p12), %s267_s24, 4096, %s269_s26, [#allocation3], %s2547_s14, %s2547_s14, %s2548_s16  }
  0x15   : > { %2365 = dma.hbm_to_vmem [thread:$0]  (!%p2360_p12), %s284_s29, 4096, %s286_s22, [#allocation6], %s2547_s14, %s2547_s14, %s2548_s16  }
  0x18   : > { %2519 = dma.done.wait (%p2370_p9), [#allocation3], 4096  }
  0x19   : > { %2521 = vsyncadd (%p2370_p9), [#allocation3], 4294963200 }
  0x1a   : > { %2523 = dma.done.wait (%p2370_p9), [#allocation6], 4096  }
  0x1b   : > { %2525 = vsyncadd (%p2370_p9), [#allocation6], 4294963200  ;;  %s1865_s23 = sshll.u32 %s2623_s13, 4  ;;  %v1909_v0 = vld [vmem:[%s2971_s1 + $0x10] sm:$0xf]  ;;  %vm455_vm0 = vcmask 261120  }
  0x1c   : > { %p362_p13 = scmp.lt.s32.totalorder %s1865_s23, 31  ;;  %v2267_v1 = vld [vmem:[%s2971_s1 + $0x14] sm:$0xf0]  ;;  %v2266_v2 = vld [vmem:[%s2971_s1 + $0x14] sm:$0xf]  ;;  %s358_s22 = sand.u32 1, %s2536_s10  }
  0x1d   : > { %v1910_v3 = vor.u32 %v2267_v1, %v1909_v0  ;;  %v1911_v4 = vld [vmem:[%s2971_s1 + $0x18] sm:$0xf0]  ;;  %v1901_v5 = vld [vmem:[%s2971_s1] sm:$0xf]  ;;  %v2265_v6 = vld [vmem:[%s2971_s1 + $0x4] sm:$0xf0] }
  0x1e   : > { %s2988_s23 = smov (!%p362_p13, %s1865_s23), 31  ;;  %v1914_v7 = vor.u32 %v2266_v2, %v1911_v4  ;;  %v2264_v8 = vld [vmem:[%s2971_s1 + $0x4] sm:$0xf]  ;;  %v1903_v9 = vld [vmem:[%s2971_s1 + $0x8] sm:$0xf0]  ;;  %v1902_v10 = vor.u32 %v2265_v6, %v1901_v5  ;;  %s1864_s21 = sshll.u32 %s358_s22, 7 }
  0x1f   : > { %s1866_s24 = sshll.u32 %s2988_s23, 2  ;;  %486 = vmatpush.bf16.msra.mxu0 %v1910_v3  ;;  %v2282_v11 = vld [vmem:[#allocation2 + $0x74] sm:$0xf]  ;;  %v1991_v12 = vld [vmem:[#allocation2 + $0x78] sm:$0xf0]  ;;  %v1906_v13 = vor.u32 %v2264_v8, %v1903_v9  ;;  %s2903_s26 = scalar_lea.vmem [#allocation7], %s1864_s21 }
  0x20   : > { %s2703_s16 = scalar_lea.vmem %s2970_s0, %s1866_s24  ;;  %535 = vmatpush.bf16.msra.mxu1 %v1914_v7  ;;  %v1994_v14 = vor.u32 %v2282_v11, %v1991_v12  ;;  %v2298_v15 = vld [vmem:[#allocation2 + $0xf4] sm:$0xf]  ;;  %v2055_v16 = vld [vmem:[#allocation2 + $0xf8] sm:$0xf0]  ;;  %v2280_v19 = vld [vmem:[#allocation2 + $0x64] sm:$0xf] }
  0x21   : > { %v2058_v17 = vor.u32 %v2298_v15, %v2055_v16  ;;  %v2256_v18 = vld [vmem:[%s2703_s16] sm:$0xff]  ;;  %v1983_v20 = vld [vmem:[#allocation2 + $0x68] sm:$0xf0]  ;;  %v2278_v26 = vld [vmem:[#allocation2 + $0x54] sm:$0xf]  ;;  %s2348_s27 = sshll.u32 %s2623_s13, 7 }
  0x22   : > { %v2296_v21 = vld [vmem:[#allocation2 + $0xe4] sm:$0xf]  ;;  %v1986_v22 = vor.u32 %v2280_v19, %v1983_v20  ;;  %v2047_v23 = vld [vmem:[#allocation2 + $0xe8] sm:$0xf0]  ;;  %v1975_v27 = vld [vmem:[#allocation2 + $0x58] sm:$0xf0]  ;;  %s1768_s14 = scalar_lea.hbm %s2979_s9, %s2348_s27 }
  0x23   : > { %487 = vmatpush.bf16.msra.mxu0 %v1902_v10  ;;  %v2050_v24 = vor.u32 %v2296_v21, %v2047_v23  ;;  %v2257_v25 = vld [vmem:[%s2703_s16 + $0x8] sm:$0xff]  ;;  %v2294_v28 = vld [vmem:[#allocation2 + $0xd4] sm:$0xf]  ;;  %v1978_v29 = vor.u32 %v2278_v26, %v1975_v27  ;;  %v2039_v30 = vld [vmem:[#allocation2 + $0xd8] sm:$0xf0]  ;;  %s1771_s24 = sshll.u32 %s1768_s14, 4  ;;  %s1772_s24 = int_to_ptr.hbm [resolvable:$true] %s1771_s24 }
  0x24   : > { %536 = vmatpush.bf16.msra.mxu1 %v1906_v13  ;;  %v2042_v31 = vor.u32 %v2294_v28, %v2039_v30  ;;  %v2258_v32 = vld [vmem:[%s2703_s16 + $0x10] sm:$0xff]  ;;  %v2276_v33 = vld [vmem:[#allocation2 + $0x44] sm:$0xf]  ;;  %v1967_v34 = vld [vmem:[#allocation2 + $0x48] sm:$0xf0]  ;;  %s1757_s17 = scalar_lea.sflag [#allocation4], %s358_s22 }
  0x25   : > { %v2292_v35 = vld [vmem:[#allocation2 + $0xc4] sm:$0xf]  ;;  %v1970_v36 = vor.u32 %v2276_v33, %v1967_v34  ;;  %v2031_v37 = vld [vmem:[#allocation2 + $0xc8] sm:$0xf0]  ;;  %v2259_v39 = vld [vmem:[%s2703_s16 + $0x18] sm:$0xff]  ;;  %s2488_s13 = sshra.s32 %s1772_s24, 4  ;;  %s2489_s13 = int_to_ptr.hbm [resolvable:$true] %s2488_s13 }
  0x26   : > { %1915 = vmatmul.msk.bf16.vlgmr.msra.gmra.mxu0 %vm455_vm0, %v2256_v18  ;;  %v2034_v38 = vor.u32 %v2292_v35, %v2031_v37  ;;  %v2274_v40 = vld [vmem:[#allocation2 + $0x34] sm:$0xf]  ;;  %v1959_v41 = vld [vmem:[#allocation2 + $0x38] sm:$0xf0]  ;;  %v2260_v46 = vld [vmem:[%s2703_s16 + $0x20] sm:$0xff]  ;;  %s2490_s23 = scalar_lea.hbm %s2489_s13, 128  ;;  %p2495_p3 = scmp.lt.s32.totalorder %s2489_s13, %s2979_s9 }
  0x27   : > { %922 = vmatpush.bf16.msrb.mxu0 %v1994_v14  ;;  %1923 = vmatmul.msk.bf16.vlgmr.msra.gmra.mxu1 %vm455_vm0, %v2256_v18  ;;  %v2290_v42 = vld [vmem:[#allocation2 + $0xb4] sm:$0xf]  ;;  %v1962_v43 = vor.u32 %v2274_v40, %v1959_v41  ;;  %v2023_v44 = vld [vmem:[#allocation2 + $0xb8] sm:$0xf0]  ;;  %v2272_v47 = vld [vmem:[#allocation2 + $0x24] sm:$0xf]  ;;  %p2491_p0 = scmp.ne.s32.totalorder %s2489_s13, %s2490_s23 }
  0x28   : > { %971 = vmatpush.bf16.msrb.mxu1 %v2058_v17  ;;  %v2026_v45 = vor.u32 %v2290_v42, %v2023_v44  ;;  %v1951_v48 = vld [vmem:[#allocation2 + $0x28] sm:$0xf0]  ;;  %v2288_v49 = vld [vmem:[#allocation2 + $0xa4] sm:$0xf]  ;;  %v1989_v52 = vld [vmem:[#allocation2 + $0x70] sm:$0xf] }
  0x29   : > { %v1954_v50 = vor.u32 %v2272_v47, %v1951_v48  ;;  %v2015_v51 = vld [vmem:[#allocation2 + $0xa8] sm:$0xf0]  ;;  %v2283_v53 = vld [vmem:[#allocation2 + $0x74] sm:$0xf0]  ;;  %v2053_v56 = vld [vmem:[#allocation2 + $0xf0] sm:$0xf]  ;;  %p2492_p1 = pnand %p2491_p0, %p2640_p5 }
  0x2a   : > { %v2018_v54 = vor.u32 %v2288_v49, %v2015_v51  ;;  %v1990_v55 = vor.u32 %v2283_v53, %v1989_v52  ;;  %v2299_v57 = vld [vmem:[#allocation2 + $0xf4] sm:$0xf0]  ;;  %v2261_v59 = vld [vmem:[%s2703_s16 + $0x28] sm:$0xff]  ;;  %v1981_v60 = vld [vmem:[#allocation2 + $0x60] sm:$0xf]  ;;  %s2494_s27 = scalar_lea.hbm %s2979_s9, 256 }
  0x2b   : > { %923 = vmatpush.bf16.msrb.mxu0 %v1986_v22  ;;  %v2054_v58 = vor.u32 %v2299_v57, %v2053_v56  ;;  %v2281_v61 = vld [vmem:[#allocation2 + $0x64] sm:$0xf0]  ;;  %v2045_v62 = vld [vmem:[#allocation2 + $0xe0] sm:$0xf]  ;;  %v2270_v2 = vld [vmem:[#allocation2 + $0x14] sm:$0xf]  ;;  %p2493_p2 = pneg %p2492_p1  ;;  %p2496_p4 = scmp.lt.s32.totalorder %s2494_s27, %s2490_s23 }
  0x2c   : > { %972 = vmatpush.bf16.msrb.mxu1 %v2050_v24  ;;  %824 = vmatpush.bf16.msra.mxu2 %v1990_v55  ;;  %v1982_v63 = vor.u32 %v2281_v61, %v1981_v60  ;;  %v2297_v0 = vld [vmem:[#allocation2 + $0xe4] sm:$0xf0]  ;;  %v1943_v3 = vld [vmem:[#allocation2 + $0x18] sm:$0xf0]  ;;  %v1973_v4 = vld [vmem:[#allocation2 + $0x50] sm:$0xf] }
  0x2d   : > { %873 = vmatpush.bf16.msra.mxu3 %v2054_v58  ;;  %v2046_v1 = vor.u32 %v2297_v0, %v2045_v62  ;;  %v1946_v5 = vor.u32 %v2270_v2, %v1943_v3  ;;  %v2279_v6 = vld [vmem:[#allocation2 + $0x54] sm:$0xf0]  ;;  %v2037_v7 = vld [vmem:[#allocation2 + $0xd0] sm:$0xf]  ;;  %v2286_v11 = vld [vmem:[#allocation2 + $0x94] sm:$0xf]  ;;  %p2497_p7 = por %p2496_p4, %p2495_p3 }
  0x2e   : > { %v2295_v8 = vld [vmem:[#allocation2 + $0xd4] sm:$0xf0]  ;;  %v1974_v9 = vor.u32 %v2279_v6, %v1973_v4  ;;  %v2007_v12 = vld [vmem:[#allocation2 + $0x98] sm:$0xf0]  ;;  %v1965_v13 = vld [vmem:[#allocation2 + $0x40] sm:$0xf] }
  0x2f   : > { %924 = vmatpush.bf16.msrb.mxu0 %v1978_v29  ;;  %v2038_v10 = vor.u32 %v2295_v8, %v2037_v7  ;;  %v2010_v14 = vor.u32 %v2286_v11, %v2007_v12  ;;  %v2277_v15 = vld [vmem:[#allocation2 + $0x44] sm:$0xf0]  ;;  %v2029_v16 = vld [vmem:[#allocation2 + $0xc0] sm:$0xf]  ;;  %v1957_v20 = vld [vmem:[#allocation2 + $0x30] sm:$0xf]  ;;  %p2498_p8 = pnand %p2497_p7, %p2493_p2 }
  0x30   : > { %973 = vmatpush.bf16.msrb.mxu1 %v2042_v31  ;;  %825 = vmatpush.bf16.msra.mxu2 %v1982_v63  ;;  %v2293_v17 = vld [vmem:[#allocation2 + $0xc4] sm:$0xf0]  ;;  %v1966_v18 = vor.u32 %v2277_v15, %v1965_v13  ;;  %v2275_v21 = vld [vmem:[#allocation2 + $0x34] sm:$0xf0]  ;;  %v2021_v22 = vld [vmem:[#allocation2 + $0xb0] sm:$0xf] }
  0x31   : > { %874 = vmatpush.bf16.msra.mxu3 %v2046_v1  ;;  %v2030_v19 = vor.u32 %v2293_v17, %v2029_v16  ;;  %v2262_v23 = vld [vmem:[%s2703_s16 + $0x30] sm:$0xff]  ;;  %v1958_v24 = vor.u32 %v2275_v21, %v1957_v20  ;;  %v1949_v27 = vld [vmem:[#allocation2 + $0x20] sm:$0xf]  ;;  %v2273_v28 = vld [vmem:[#allocation2 + $0x24] sm:$0xf0] }
  0x32   : > { %v1950_v29 = vor.u32 %v2273_v28, %v1949_v27  ;;  %v2013_v30 = vld [vmem:[#allocation2 + $0xa0] sm:$0xf]  ;;  %v2289_v31 = vld [vmem:[#allocation2 + $0xa4] sm:$0xf0]  ;;  %v2268_v33 = vld [vmem:[#allocation2 + $0x4] sm:$0xf] }
  0x33   : > { %925 = vmatpush.bf16.msrb.mxu0 %v1970_v36  ;;  %v1935_v34 = vld [vmem:[#allocation2 + $0x8] sm:$0xf0]  ;;  %v1941_v36 = vld [vmem:[#allocation2 + $0x10] sm:$0xf]  ;;  %v2271_v37 = vld [vmem:[#allocation2 + $0x14] sm:$0xf0] }
  0x34   : > { %974 = vmatpush.bf16.msrb.mxu1 %v2034_v38  ;;  %826 = vmatpush.bf16.msra.mxu2 %v1974_v9  ;;  %v1938_v35 = vor.u32 %v2268_v33, %v1935_v34  ;;  %v2005_v38 = vld [vmem:[#allocation2 + $0x90] sm:$0xf]  ;;  %v2287_v40 = vld [vmem:[#allocation2 + $0x94] sm:$0xf0]  ;;  %v2284_v42 = vld [vmem:[#allocation2 + $0x84] sm:$0xf] }
  0x35   : > { %875 = vmatpush.bf16.msra.mxu3 %v2038_v10  ;;  %v2006_v41 = vor.u32 %v2287_v40, %v2005_v38  ;;  %v1933_v44 = vld [vmem:[#allocation2] sm:$0xf]  ;;  %v2285_v48 = vld [vmem:[#allocation2 + $0x84] sm:$0xf0]  ;;  %v2263_v51 = vld [vmem:[%s2703_s16 + $0x38] sm:$0xff]  ;;  %s1769_s16 = sshll.u32 %s2903_s26, 4  ;;  %s1770_s16 = int_to_ptr.vmem [resolvable:$true] %s1769_s16 }
  0x36   : > { %1916 = vmatmul.msk.bf16.gmra.mxu0 %vm455_vm0, %v2257_v25  ;;  %v1997_v47 = vld [vmem:[#allocation2 + $0x80] sm:$0xf]  ;;  %v2117_v57 = vld [vmem:[#allocation5 + $0x70] sm:$0xf]  ;;  %v2315_v58 = vld [vmem:[#allocation5 + $0x74] sm:$0xf0] }
  0x37   : > { %1924 = vmatmul.msk.bf16.gmra.mxu1 %vm455_vm0, %v2257_v25  ;;  %926 = vmatpush.bf16.msrb.mxu0 %v1962_v43  ;;  %v2291_v25 = vld [vmem:[#allocation2 + $0xb4] sm:$0xf0]  ;;  %v1999_v43 = vld [vmem:[#allocation2 + $0x88] sm:$0xf0]  ;;  %v389_v52 = vld [vmem:[%s2972_s2] sm:$0x3] }
  0x38   : > { %975 = vmatpush.bf16.msrb.mxu1 %v2026_v45  ;;  %827 = vmatpush.bf16.msra.mxu2 %v1966_v18  ;;  %v2022_v26 = vor.u32 %v2291_v25, %v2021_v22  ;;  %v2002_v45 = vor.u32 %v2284_v42, %v1999_v43  ;;  %v2732_v55 = vperm.slane %v389_v52, 0  ;;  %v2734_v56 = vperm.slane %v389_v52, 1  ;;  %v2181_v60 = vld [vmem:[#allocation5 + $0xf0] sm:$0xf]  ;;  %v2331_v61 = vld [vmem:[#allocation5 + $0xf4] sm:$0xf0] }
  0x39   : > { %876 = vmatpush.bf16.msra.mxu3 %v2030_v19  ;;  %v2182_v62 = vor.u32 %v2331_v61, %v2181_v60  ;;  %v2314_v9 = vld [vmem:[#allocation5 + $0x74] sm:$0xf]  ;;  %v2119_v10 = vld [vmem:[#allocation5 + $0x78] sm:$0xf0]  ;;  %v2109_v19 = vld [vmem:[#allocation5 + $0x60] sm:$0xf] }
  0x3a   : > { %v2122_v12 = vor.u32 %v2314_v9, %v2119_v10  ;;  %v2330_v13 = vld [vmem:[#allocation5 + $0xf4] sm:$0xf]  ;;  %v2313_v20 = vld [vmem:[#allocation5 + $0x64] sm:$0xf0]  ;;  %v2173_v22 = vld [vmem:[#allocation5 + $0xe0] sm:$0xf] }
  0x3b   : > { %927 = vmatpush.bf16.msrb.mxu0 %v1954_v50  ;;  %v1998_v50 = vor.u32 %v2285_v48, %v1997_v47  ;;  %v2110_v21 = vor.u32 %v2313_v20, %v2109_v19  ;;  %v2175_v40 = vld [vmem:[#allocation5 + $0xe8] sm:$0xf0]  ;;  %v2165_v48 = vld [vmem:[#allocation5 + $0xd0] sm:$0xf]  ;;  %v2093_v9 = vld [vmem:[#allocation5 + $0x40] sm:$0xf] }
  0x3c   : > { %976 = vmatpush.bf16.msrb.mxu1 %v2018_v54  ;;  %828 = vmatpush.bf16.msra.mxu2 %v1958_v24  ;;  %v2309_v10 = vld [vmem:[#allocation5 + $0x44] sm:$0xf0] }
  0x3d   : > { %877 = vmatpush.bf16.msra.mxu3 %v2022_v26 }
  0x3f   : > { %928 = vmatpush.bf16.msrb.mxu0 %v1946_v5 }
  0x40   : > { %977 = vmatpush.bf16.msrb.mxu1 %v2010_v14  ;;  %829 = vmatpush.bf16.msra.mxu2 %v1950_v29  ;;  %v2183_v14 = vld [vmem:[#allocation5 + $0xf8] sm:$0xf0] }
  0x41   : > { %v2186_v16 = vor.u32 %v2330_v13, %v2183_v14  ;;  %v2325_v13 = vld [vmem:[#allocation5 + $0xc4] sm:$0xf0] }
  0x43   : > { %929 = vmatpush.bf16.msrb.mxu0 %v1938_v35  ;;  %v2312_v35 = vld [vmem:[#allocation5 + $0x64] sm:$0xf] }
  0x44   : > { %978 = vmatpush.bf16.msrb.mxu1 %v2002_v45  ;;  %v2101_v45 = vld [vmem:[#allocation5 + $0x50] sm:$0xf] }
  0x46   : > { %1917 = vmatmul.msk.bf16.gmra.mxu0 %vm455_vm0, %v2258_v32 }
  0x47   : > { %1925 = vmatmul.msk.bf16.gmra.mxu1 %vm455_vm0, %v2258_v32  ;;  %v2014_v32 = vor.u32 %v2289_v31, %v2013_v30  ;;  %1364 = vmatpush.bf16.msra.mxu0 %v2122_v12  ;;  %v2157_v12 = vld [vmem:[#allocation5 + $0xc0] sm:$0xf] }
  0x48   : > { %1413 = vmatpush.bf16.msra.mxu1 %v2186_v16  ;;  %v2158_v14 = vor.u32 %v2325_v13, %v2157_v12 }
  0x49   : > { %878 = vmatpush.bf16.msra.mxu3 %v2014_v32 }
  0x4d   : > { %879 = vmatpush.bf16.msra.mxu3 %v2006_v41 }
  0x51   : > { %880 = vmatpush.bf16.msra.mxu3 %v1998_v50 }
  0x55   : > { %1315 = vmatpush.bf16.msrb.mxu3 %v2182_v62 }
  0x56   : > { %1918 = vmatmul.msk.bf16.gmra.mxu0 %vm455_vm0, %v2259_v39 }
  0x57   : > { %1926 = vmatmul.msk.bf16.gmra.mxu1 %vm455_vm0, %v2259_v39  ;;  %v1942_v39 = vor.u32 %v2271_v37, %v1941_v36  ;;  %v2111_v36 = vld [vmem:[#allocation5 + $0x68] sm:$0xf0] }
  0x58   : > { %v2114_v38 = vor.u32 %v2312_v35, %v2111_v36  ;;  %v2085_v35 = vld [vmem:[#allocation5 + $0x30] sm:$0xf]  ;;  %v2307_v36 = vld [vmem:[#allocation5 + $0x34] sm:$0xf0] }
  0x59   : > { %830 = vmatpush.bf16.msra.mxu2 %v1942_v39  ;;  %v2328_v39 = vld [vmem:[#allocation5 + $0xe4] sm:$0xf] }
  0x5a   : > { %v2178_v42 = vor.u32 %v2328_v39, %v2175_v40  ;;  %1365 = vmatpush.bf16.msra.mxu0 %v2114_v38  ;;  %v2149_v38 = vld [vmem:[#allocation5 + $0xb0] sm:$0xf]  ;;  %v2323_v39 = vld [vmem:[#allocation5 + $0xb4] sm:$0xf0] }
  0x5b   : > { %v2150_v40 = vor.u32 %v2323_v39, %v2149_v38 }
  0x5c   : > { %1414 = vmatpush.bf16.msra.mxu1 %v2178_v42 }
  0x66   : > { %1919 = vmatmul.msk.bf16.gmra.mxu0 %vm455_vm0, %v2260_v46 }
  0x67   : > { %1927 = vmatmul.msk.bf16.gmra.mxu1 %vm455_vm0, %v2260_v46  ;;  %v2269_v46 = vld [vmem:[#allocation2 + $0x4] sm:$0xf0] }
  0x68   : > { %v1934_v49 = vor.u32 %v2269_v46, %v1933_v44  ;;  %v2311_v46 = vld [vmem:[#allocation5 + $0x54] sm:$0xf0] }
  0x69   : > { %v2102_v47 = vor.u32 %v2311_v46, %v2101_v45 }
  0x6a   : > { %831 = vmatpush.bf16.msra.mxu2 %v1934_v49  ;;  %v2327_v49 = vld [vmem:[#allocation5 + $0xd4] sm:$0xf0] }
  0x6b   : > { %v2166_v50 = vor.u32 %v2327_v49, %v2165_v48 }
  0x76   : > { %1920 = vmatmul.msk.bf16.gmra.mxu0 %vm455_vm0, %v2261_v59 }
  0x77   : > { %1928 = vmatmul.msk.bf16.gmra.mxu1 %vm455_vm0, %v2261_v59  ;;  %v2118_v59 = vor.u32 %v2315_v58, %v2117_v57 }
  0x79   : > { %1266 = vmatpush.bf16.msrb.mxu2 %v2118_v59 }
  0x7d   : > { %1267 = vmatpush.bf16.msrb.mxu2 %v2110_v21 }
  0x81   : > { %1268 = vmatpush.bf16.msrb.mxu2 %v2102_v47 }
  0x86   : > { %1921 = vmatmul.msk.bf16.gmra.mxu0 %vm455_vm0, %v2262_v23 }
  0x87   : > { %1929 = vmatmul.msk.bf16.gmra.mxu1 %vm455_vm0, %v2262_v23  ;;  %v2329_v23 = vld [vmem:[#allocation5 + $0xe4] sm:$0xf0] }
  0x88   : > { %v2174_v24 = vor.u32 %v2329_v23, %v2173_v22 }
  0x8a   : > { %1316 = vmatpush.bf16.msrb.mxu3 %v2174_v24 }
  0x8e   : > { %1317 = vmatpush.bf16.msrb.mxu3 %v2166_v50 }
  0x92   : > { %1318 = vmatpush.bf16.msrb.mxu3 %v2158_v14 }
  0x96   : > { %1922 = vmatmul.msk.bf16.gmra.mxu0 %vm455_vm0, %v2263_v51  ;;  %1319 = vmatpush.bf16.msrb.mxu3 %v2150_v40 }
  0x97   : > { %1930 = vmatmul.msk.bf16.gmra.mxu1 %vm455_vm0, %v2263_v51 }
  0xa3   : > { %v489_v53 = vpop.f32.mrf.mxu0 }
  0xa4   : > { %v538_v54 = vpop.f32.mrf.mxu1  ;;  %v490_v63 = vadd.f32 %v489_v53, %v2732_v55 }
  0xa5   : > { %v539_v0 = vadd.f32 %v538_v54, %v2734_v56 }
  0xa6   : > { %v578_v5 = vmax.f32 %v490_v63, 0.0  ;;  %v2310_v63 = vld [vmem:[#allocation5 + $0x54] sm:$0xf] }
  0xa7   : > { %v579_v7 = vmax.f32 %v539_v0, 0.0  ;;  %v2103_v0 = vld [vmem:[#allocation5 + $0x58] sm:$0xf0] }
  0xab   : > { %v491_v1 = vpop.f32.mrf.mxu0 }
  0xac   : > { %v492_v2 = vadd.f32 %v491_v1, %v2732_v55  ;;  %v540_v3 = vpop.f32.mrf.mxu1 }
  0xad   : > { %v541_v4 = vadd.f32 %v540_v3, %v2734_v56  ;;  %v2326_v3 = vld [vmem:[#allocation5 + $0xd4] sm:$0xf] }
  0xae   : > { %v580_v6 = vmax.f32 %v492_v2, 0.0  ;;  %v2106_v2 = vor.u32 %v2310_v63, %v2103_v0  ;;  %v2077_v63 = vld [vmem:[#allocation5 + $0x20] sm:$0xf]  ;;  %v2305_v0 = vld [vmem:[#allocation5 + $0x24] sm:$0xf0] }
  0xaf   : > { %v581_v8 = vmax.f32 %v541_v4, 0.0  ;;  %v2167_v4 = vld [vmem:[#allocation5 + $0xd8] sm:$0xf0] }
  0xb0   : > { %v610_v11 = vpack.c.bf16 %v580_v6, %v578_v5  ;;  %v2170_v6 = vor.u32 %v2326_v3, %v2167_v4  ;;  %1366 = vmatpush.bf16.msra.mxu0 %v2106_v2  ;;  %v2141_v2 = vld [vmem:[#allocation5 + $0xa0] sm:$0xf]  ;;  %v2321_v3 = vld [vmem:[#allocation5 + $0xa4] sm:$0xf0] }
  0xb1   : > { %v611_v15 = vpack.c.bf16 %v581_v8, %v579_v7  ;;  %v2142_v4 = vor.u32 %v2321_v3, %v2141_v2 }
  0xb2   : > { %832 = vmatmul.bf16.vlgmr.msra.gmra.mxu2 %v610_v11  ;;  %930 = vmatmul.bf16.vlgmr.msrb.gmra.mxu0 %v610_v11  ;;  %v2094_v11 = vor.u32 %v2309_v10, %v2093_v9 }
  0xb3   : > { %881 = vmatmul.bf16.vlgmr.msra.gmra.mxu3 %v611_v15  ;;  %979 = vmatmul.bf16.vlgmr.msrb.gmra.mxu1 %v611_v15  ;;  %v494_v17 = vpop.f32.mrf.mxu0 }
  0xb4   : > { %v543_v18 = vpop.f32.mrf.mxu1  ;;  %v495_v25 = vadd.f32 %v494_v17, %v2732_v55  ;;  %1415 = vmatpush.bf16.msra.mxu1 %v2170_v6  ;;  %1269 = vmatpush.bf16.msrb.mxu2 %v2094_v11 }
  0xb5   : > { %v544_v26 = vadd.f32 %v543_v18, %v2734_v56  ;;  %1320 = vmatpush.bf16.msrb.mxu3 %v2142_v4 }
  0xb6   : > { %v582_v31 = vmax.f32 %v495_v25, 0.0  ;;  %v2308_v25 = vld [vmem:[#allocation5 + $0x44] sm:$0xf] }
  0xb7   : > { %v583_v33 = vmax.f32 %v544_v26, 0.0  ;;  %v2095_v26 = vld [vmem:[#allocation5 + $0x48] sm:$0xf0] }
  0xbb   : > { %v496_v27 = vpop.f32.mrf.mxu0 }
  0xbc   : > { %v497_v28 = vadd.f32 %v496_v27, %v2732_v55  ;;  %v545_v29 = vpop.f32.mrf.mxu1 }
  0xbd   : > { %v546_v30 = vadd.f32 %v545_v29, %v2734_v56  ;;  %v2324_v29 = vld [vmem:[#allocation5 + $0xc4] sm:$0xf] }
  0xbe   : > { %v584_v32 = vmax.f32 %v497_v28, 0.0  ;;  %v2098_v28 = vor.u32 %v2308_v25, %v2095_v26  ;;  %v2303_v25 = vld [vmem:[#allocation5 + $0x14] sm:$0xf0]  ;;  %v2133_v26 = vld [vmem:[#allocation5 + $0x90] sm:$0xf] }
  0xbf   : > { %v585_v34 = vmax.f32 %v546_v30, 0.0  ;;  %v2159_v30 = vld [vmem:[#allocation5 + $0xc8] sm:$0xf0] }
  0xc0   : > { %v612_v37 = vpack.c.bf16 %v584_v32, %v582_v31  ;;  %v2162_v32 = vor.u32 %v2324_v29, %v2159_v30  ;;  %1367 = vmatpush.bf16.msra.mxu0 %v2098_v28  ;;  %v2319_v29 = vld [vmem:[#allocation5 + $0x94] sm:$0xf0]  ;;  %v2302_v30 = vld [vmem:[#allocation5 + $0x14] sm:$0xf] }
  0xc1   : > { %v613_v41 = vpack.c.bf16 %v585_v34, %v583_v33 }
  0xc2   : > { %837 = vmatmul.bf16.gmra.mxu2 %v612_v37  ;;  %935 = vmatmul.bf16.gmra.mxu0 %v612_v37  ;;  %v2086_v37 = vor.u32 %v2307_v36, %v2085_v35 }
  0xc3   : > { %886 = vmatmul.bf16.gmra.mxu3 %v613_v41  ;;  %984 = vmatmul.bf16.gmra.mxu1 %v613_v41  ;;  %v499_v43 = vpop.f32.mrf.mxu0 }
  0xc4   : > { %v548_v44 = vpop.f32.mrf.mxu1  ;;  %v500_v51 = vadd.f32 %v499_v43, %v2732_v55  ;;  %1416 = vmatpush.bf16.msra.mxu1 %v2162_v32  ;;  %1270 = vmatpush.bf16.msrb.mxu2 %v2086_v37  ;;  %v2134_v32 = vor.u32 %v2319_v29, %v2133_v26 }
  0xc5   : > { %v549_v52 = vadd.f32 %v548_v44, %v2734_v56 }
  0xc6   : > { %v586_v59 = vmax.f32 %v500_v51, 0.0  ;;  %v2306_v51 = vld [vmem:[#allocation5 + $0x34] sm:$0xf]  ;;  %1321 = vmatpush.bf16.msrb.mxu3 %v2134_v32 }
  0xc7   : > { %v587_v61 = vmax.f32 %v549_v52, 0.0  ;;  %v2087_v52 = vld [vmem:[#allocation5 + $0x38] sm:$0xf0] }
  0xcb   : > { %v501_v53 = vpop.f32.mrf.mxu0 }
  0xcc   : > { %v502_v54 = vadd.f32 %v501_v53, %v2732_v55  ;;  %v550_v57 = vpop.f32.mrf.mxu1 }
  0xcd   : > { %v551_v58 = vadd.f32 %v550_v57, %v2734_v56  ;;  %v2322_v57 = vld [vmem:[#allocation5 + $0xb4] sm:$0xf] }
  0xce   : > { %v588_v60 = vmax.f32 %v502_v54, 0.0  ;;  %v2090_v54 = vor.u32 %v2306_v51, %v2087_v52  ;;  %v2061_v52 = vld [vmem:[#allocation5] sm:$0xf] }
  0xcf   : > { %v589_v62 = vmax.f32 %v551_v58, 0.0  ;;  %v2151_v58 = vld [vmem:[#allocation5 + $0xb8] sm:$0xf0] }
  0xd0   : > { %v614_v1 = vpack.c.bf16 %v588_v60, %v586_v59  ;;  %v2154_v60 = vor.u32 %v2322_v57, %v2151_v58  ;;  %1368 = vmatpush.bf16.msra.mxu0 %v2090_v54 }
  0xd1   : > { %v615_v5 = vpack.c.bf16 %v589_v62, %v587_v61 }
  0xd2   : > { %842 = vmatmul.bf16.gmra.mxu2 %v614_v1  ;;  %940 = vmatmul.bf16.gmra.mxu0 %v614_v1  ;;  %v2078_v1 = vor.u32 %v2305_v0, %v2077_v63 }
  0xd3   : > { %891 = vmatmul.bf16.gmra.mxu3 %v615_v5  ;;  %989 = vmatmul.bf16.gmra.mxu1 %v615_v5  ;;  %v504_v7 = vpop.f32.mrf.mxu0 }
  0xd4   : > { %v553_v8 = vpop.f32.mrf.mxu1  ;;  %v505_v15 = vadd.f32 %v504_v7, %v2732_v55  ;;  %1417 = vmatpush.bf16.msra.mxu1 %v2154_v60  ;;  %1271 = vmatpush.bf16.msrb.mxu2 %v2078_v1  ;;  %v2317_v60 = vld [vmem:[#allocation5 + $0x84] sm:$0xf0]  ;;  %v2127_v1 = vld [vmem:[#allocation5 + $0x88] sm:$0xf0] }
  0xd5   : > { %v554_v16 = vadd.f32 %v553_v8, %v2734_v56 }
  0xd6   : > { %v590_v21 = vmax.f32 %v505_v15, 0.0  ;;  %v2304_v15 = vld [vmem:[#allocation5 + $0x24] sm:$0xf] }
  0xd7   : > { %v591_v23 = vmax.f32 %v554_v16, 0.0  ;;  %v2079_v16 = vld [vmem:[#allocation5 + $0x28] sm:$0xf0] }
  0xdb   : > { %v506_v17 = vpop.f32.mrf.mxu0 }
  0xdc   : > { %v507_v18 = vadd.f32 %v506_v17, %v2732_v55  ;;  %v555_v19 = vpop.f32.mrf.mxu1 }
  0xdd   : > { %v556_v20 = vadd.f32 %v555_v19, %v2734_v56  ;;  %v2320_v19 = vld [vmem:[#allocation5 + $0xa4] sm:$0xf] }
  0xde   : > { %v592_v22 = vmax.f32 %v507_v18, 0.0  ;;  %v2082_v18 = vor.u32 %v2304_v15, %v2079_v16 }
  0xdf   : > { %v593_v24 = vmax.f32 %v556_v20, 0.0  ;;  %v2143_v20 = vld [vmem:[#allocation5 + $0xa8] sm:$0xf0] }
  0xe0   : > { %v616_v27 = vpack.c.bf16 %v592_v22, %v590_v21  ;;  %v2146_v22 = vor.u32 %v2320_v19, %v2143_v20  ;;  %1369 = vmatpush.bf16.msra.mxu0 %v2082_v18 }
  0xe1   : > { %v617_v31 = vpack.c.bf16 %v593_v24, %v591_v23  ;;  %v2069_v24 = vld [vmem:[#allocation5 + $0x10] sm:$0xf] }
  0xe2   : > { %847 = vmatmul.bf16.gmra.mxu2 %v616_v27  ;;  %945 = vmatmul.bf16.gmra.mxu0 %v616_v27  ;;  %v2070_v28 = vor.u32 %v2303_v25, %v2069_v24 }
  0xe3   : > { %896 = vmatmul.bf16.gmra.mxu3 %v617_v31  ;;  %994 = vmatmul.bf16.gmra.mxu1 %v617_v31  ;;  %v509_v33 = vpop.f32.mrf.mxu0  ;;  %v2071_v31 = vld [vmem:[#allocation5 + $0x18] sm:$0xf0] }
  0xe4   : > { %v558_v34 = vpop.f32.mrf.mxu1  ;;  %v510_v41 = vadd.f32 %v509_v33, %v2732_v55  ;;  %1418 = vmatpush.bf16.msra.mxu1 %v2146_v22  ;;  %v2074_v33 = vor.u32 %v2302_v30, %v2071_v31  ;;  %1272 = vmatpush.bf16.msrb.mxu2 %v2070_v28  ;;  %v2347_v28 = vld [vmem:[%s2977_s7 + $0x78] sm:$0xff] }
  0xe5   : > { %v559_v42 = vadd.f32 %v558_v34, %v2734_v56 }
  0xe6   : > { %v594_v47 = vmax.f32 %v510_v41, 0.0  ;;  %1370 = vmatpush.bf16.msra.mxu0 %v2074_v33 }
  0xe7   : > { %v595_v49 = vmax.f32 %v559_v42, 0.0 }
  0xeb   : > { %v511_v43 = vpop.f32.mrf.mxu0 }
  0xec   : > { %v512_v44 = vadd.f32 %v511_v43, %v2732_v55  ;;  %v560_v45 = vpop.f32.mrf.mxu1 }
  0xed   : > { %v561_v46 = vadd.f32 %v560_v45, %v2734_v56 }
  0xee   : > { %v596_v48 = vmax.f32 %v512_v44, 0.0 }
  0xef   : > { %v597_v50 = vmax.f32 %v561_v46, 0.0 }
  0xf0   : > { %v618_v53 = vpack.c.bf16 %v596_v48, %v594_v47  ;;  %v2318_v48 = vld [vmem:[#allocation5 + $0x94] sm:$0xf] }
  0xf1   : > { %v619_v59 = vpack.c.bf16 %v597_v50, %v595_v49  ;;  %v2135_v49 = vld [vmem:[#allocation5 + $0x98] sm:$0xf0] }
  0xf2   : > { %852 = vmatmul.bf16.gmra.mxu2 %v618_v53  ;;  %950 = vmatmul.bf16.gmra.mxu0 %v618_v53  ;;  %v2138_v50 = vor.u32 %v2318_v48, %v2135_v49  ;;  %v2301_v53 = vld [vmem:[#allocation5 + $0x4] sm:$0xf0] }
  0xf3   : > { %901 = vmatmul.bf16.gmra.mxu3 %v619_v59  ;;  %999 = vmatmul.bf16.gmra.mxu1 %v619_v59  ;;  %v514_v61 = vpop.f32.mrf.mxu0  ;;  %v2062_v58 = vor.u32 %v2301_v53, %v2061_v52  ;;  %v2125_v59 = vld [vmem:[#allocation5 + $0x80] sm:$0xf]  ;;  %v2346_v52 = vld [vmem:[%s2977_s7 + $0x70] sm:$0xff] }
  0xf4   : > { %v563_v62 = vpop.f32.mrf.mxu1  ;;  %v515_v5 = vadd.f32 %v514_v61, %v2732_v55  ;;  %1419 = vmatpush.bf16.msra.mxu1 %v2138_v50  ;;  %v2316_v61 = vld [vmem:[#allocation5 + $0x84] sm:$0xf]  ;;  %v2126_v0 = vor.u32 %v2317_v60, %v2125_v59 }
  0xf5   : > { %v564_v6 = vadd.f32 %v563_v62, %v2734_v56  ;;  %1273 = vmatpush.bf16.msrb.mxu2 %v2062_v58  ;;  %v2130_v3 = vor.u32 %v2316_v61, %v2127_v1 }
  0xf6   : > { %v598_v11 = vmax.f32 %v515_v5, 0.0  ;;  %1322 = vmatpush.bf16.msrb.mxu3 %v2126_v0 }
  0xf7   : > { %v599_v13 = vmax.f32 %v564_v6, 0.0 }
  0xf8   : > { %1420 = vmatpush.bf16.msra.mxu1 %v2130_v3 }
  0xfa   : > { %1691 = vmatpush.bf16.msra.mxu3 %v2347_v28 }
  0xfb   : > { %v516_v7 = vpop.f32.mrf.mxu0 }
  0xfc   : > { %v517_v8 = vadd.f32 %v516_v7, %v2732_v55  ;;  %v565_v9 = vpop.f32.mrf.mxu1 }
  0xfd   : > { %v566_v10 = vadd.f32 %v565_v9, %v2734_v56 }
  0xfe   : > { %v600_v12 = vmax.f32 %v517_v8, 0.0  ;;  %1692 = vmatpush.bf16.msra.mxu3 %v2346_v52 }
  0xff   : > { %v601_v14 = vmax.f32 %v566_v10, 0.0  ;;  %v2300_v10 = vld [vmem:[#allocation5 + $0x4] sm:$0xf] }
 0x100   : > { %v620_v17 = vpack.c.bf16 %v600_v12, %v598_v11  ;;  %v2063_v11 = vld [vmem:[#allocation5 + $0x8] sm:$0xf0] }
 0x101   : > { %v621_v21 = vpack.c.bf16 %v601_v14, %v599_v13 }
 0x102   : > { %857 = vmatmul.bf16.gmra.mxu2 %v620_v17  ;;  %955 = vmatmul.bf16.gmra.mxu0 %v620_v17 }
 0x103   : > { %906 = vmatmul.bf16.gmra.mxu3 %v621_v21  ;;  %1004 = vmatmul.bf16.gmra.mxu1 %v621_v21  ;;  %v519_v23 = vpop.f32.mrf.mxu0 }
 0x104   : > { %v568_v27 = vpop.f32.mrf.mxu1  ;;  %v520_v34 = vadd.f32 %v519_v23, %v2732_v55 }
 0x105   : > { %v569_v35 = vadd.f32 %v568_v27, %v2734_v56  ;;  %v2339_v27 = vld [vmem:[%s2977_s7 + $0x38] sm:$0xff] }
 0x106   : > { %v602_v40 = vmax.f32 %v520_v34, 0.0  ;;  %1642 = vmatpush.bf16.msra.mxu2 %v2339_v27 }
 0x107   : > { %v603_v42 = vmax.f32 %v569_v35, 0.0 }
 0x10b   : > { %v521_v36 = vpop.f32.mrf.mxu0 }
 0x10c   : > { %v522_v37 = vadd.f32 %v521_v36, %v2732_v55  ;;  %v570_v38 = vpop.f32.mrf.mxu1 }
 0x10d   : > { %v571_v39 = vadd.f32 %v570_v38, %v2734_v56 }
 0x10e   : > { %v604_v41 = vmax.f32 %v522_v37, 0.0 }
 0x10f   : > { %v605_v43 = vmax.f32 %v571_v39, 0.0 }
 0x110   : > { %v622_v44 = vpack.c.bf16 %v604_v41, %v602_v40 }
 0x111   : > { %v623_v45 = vpack.c.bf16 %v605_v43, %v603_v42 }
 0x112   : > { %862 = vmatmul.bf16.gmra.mxu2 %v622_v44  ;;  %960 = vmatmul.bf16.gmra.mxu0 %v622_v44 }
 0x113   : > { %911 = vmatmul.bf16.gmra.mxu3 %v623_v45  ;;  %1009 = vmatmul.bf16.gmra.mxu1 %v623_v45  ;;  %v524_v46 = vpop.f32.mrf.mxu0 }
 0x114   : > { %v573_v47 = vpop.f32.mrf.mxu1  ;;  %v525_v51 = vadd.f32 %v524_v46, %v2732_v55 }
 0x115   : > { %v574_v54 = vadd.f32 %v573_v47, %v2734_v56 }
 0x116   : > { %v606_v4 = vmax.f32 %v525_v51, 0.0  ;;  %v2338_v51 = vld [vmem:[%s2977_s7 + $0x30] sm:$0xff] }
 0x117   : > { %v607_v6 = vmax.f32 %v574_v54, 0.0  ;;  %1643 = vmatpush.bf16.msra.mxu2 %v2338_v51 }
 0x11b   : > { %v526_v57 = vpop.f32.mrf.mxu0 }
 0x11c   : > { %v527_v62 = vadd.f32 %v526_v57, %v2732_v55  ;;  %v575_v63 = vpop.f32.mrf.mxu1  ;;  %v2066_v55 = vor.u32 %v2300_v10, %v2063_v11 }
 0x11d   : > { %v576_v2 = vadd.f32 %v575_v63, %v2734_v56  ;;  %v658_v56 = vld [vmem:[%s2974_s4] sm:$0x3] }
 0x11e   : > { %v608_v5 = vmax.f32 %v527_v62, 0.0  ;;  %1371 = vmatpush.bf16.msra.mxu0 %v2066_v55  ;;  %v2771_v13 = vperm.slane %v658_v56, 1  ;;  %v2774_v17 = vperm.slane %v658_v56, 0 }
 0x11f   : > { %v609_v7 = vmax.f32 %v576_v2, 0.0 }
 0x120   : > { %v624_v8 = vpack.c.bf16 %v608_v5, %v606_v4 }
 0x121   : > { %v625_v9 = vpack.c.bf16 %v609_v7, %v607_v6 }
 0x122   : > { %867 = vmatmul.bf16.gmra.mxu2 %v624_v8  ;;  %965 = vmatmul.bf16.gmra.mxu0 %v624_v8 }
 0x123   : > { %916 = vmatmul.bf16.gmra.mxu3 %v625_v9  ;;  %1014 = vmatmul.bf16.gmra.mxu1 %v625_v9 }
 0x12f   : > { %v931_v12 = vpop.f32.mrf.mxu0 }
 0x130   : > { %v980_v14 = vpop.f32.mrf.mxu1  ;;  %v932_v15 = vadd.f32 %v931_v12, %v2771_v13 }
 0x132   : > { %v981_v20 = vadd.f32 %v980_v14, %v932_v15 }
 0x134   : > { %v1021_v25 = vmax.f32 %v981_v20, 0.0 }
 0x135   : > { %v833_v16 = vpop.f32.mrf.mxu2 }
 0x136   : > { %v882_v18 = vpop.f32.mrf.mxu3  ;;  %v834_v23 = vadd.f32 %v833_v16, %v2774_v17 }
 0x137   : > { %v933_v19 = vpop.f32.mrf.mxu0 }
 0x138   : > { %v934_v21 = vadd.f32 %v933_v19, %v2771_v13  ;;  %v982_v22 = vpop.f32.mrf.mxu1  ;;  %v883_v30 = vadd.f32 %v882_v18, %v834_v23  ;;  %v2337_v18 = vld [vmem:[%s2977_s7 + $0x28] sm:$0xff] }
 0x139   : > { %v2345_v19 = vld [vmem:[%s2977_s7 + $0x68] sm:$0xff]  ;;  %1644 = vmatpush.bf16.msra.mxu2 %v2337_v18 }
 0x13a   : > { %v983_v24 = vadd.f32 %v982_v22, %v934_v21  ;;  %v1020_v37 = vmax.f32 %v883_v30, 0.0  ;;  %1693 = vmatpush.bf16.msra.mxu3 %v2345_v19 }
 0x13c   : > { %v1023_v26 = vmax.f32 %v983_v24, 0.0 }
 0x13d   : > { %v835_v29 = vpop.f32.mrf.mxu2 }
 0x13e   : > { %v836_v31 = vadd.f32 %v835_v29, %v2774_v17  ;;  %v884_v32 = vpop.f32.mrf.mxu3  ;;  %v1053_v33 = vpack.c.bf16 %v1023_v26, %v1021_v25 }
 0x13f   : > { %v936_v34 = vpop.f32.mrf.mxu0 }
 0x140   : > { %v885_v35 = vadd.f32 %v884_v32, %v836_v31  ;;  %v985_v36 = vpop.f32.mrf.mxu1  ;;  %1323 = vmatmul.bf16.vlgmr.msrb.gmra.mxu3 %v1053_v33  ;;  %1421 = vmatmul.bf16.vlgmr.msra.gmra.mxu1 %v1053_v33  ;;  %v937_v39 = vadd.f32 %v936_v34, %v2771_v13 }
 0x142   : > { %v1022_v38 = vmax.f32 %v885_v35, 0.0  ;;  %v986_v44 = vadd.f32 %v985_v36, %v937_v39 }
 0x144   : > { %v1052_v40 = vpack.c.bf16 %v1022_v38, %v1020_v37  ;;  %v1025_v49 = vmax.f32 %v986_v44, 0.0 }
 0x145   : > { %v838_v41 = vpop.f32.mrf.mxu2 }
 0x146   : > { %v887_v42 = vpop.f32.mrf.mxu3  ;;  %1274 = vmatmul.bf16.vlgmr.msrb.gmra.mxu2 %v1052_v40  ;;  %1372 = vmatmul.bf16.vlgmr.msra.gmra.mxu0 %v1052_v40  ;;  %v839_v47 = vadd.f32 %v838_v41, %v2774_v17 }
 0x147   : > { %v938_v43 = vpop.f32.mrf.mxu0 }
 0x148   : > { %v939_v45 = vadd.f32 %v938_v43, %v2771_v13  ;;  %v987_v46 = vpop.f32.mrf.mxu1  ;;  %v888_v54 = vadd.f32 %v887_v42, %v839_v47  ;;  %v2336_v42 = vld [vmem:[%s2977_s7 + $0x20] sm:$0xff] }
 0x149   : > { %v2344_v43 = vld [vmem:[%s2977_s7 + $0x60] sm:$0xff]  ;;  %1645 = vmatpush.bf16.msra.mxu2 %v2336_v42 }
 0x14a   : > { %v988_v48 = vadd.f32 %v987_v46, %v939_v45  ;;  %v1024_v63 = vmax.f32 %v888_v54, 0.0  ;;  %1694 = vmatpush.bf16.msra.mxu3 %v2344_v43 }
 0x14c   : > { %v1027_v50 = vmax.f32 %v988_v48, 0.0 }
 0x14d   : > { %v840_v53 = vpop.f32.mrf.mxu2 }
 0x14e   : > { %v841_v57 = vadd.f32 %v840_v53, %v2774_v17  ;;  %v889_v58 = vpop.f32.mrf.mxu3  ;;  %v1055_v59 = vpack.c.bf16 %v1027_v50, %v1025_v49 }
 0x14f   : > { %v941_v60 = vpop.f32.mrf.mxu0 }
 0x150   : > { %v890_v61 = vadd.f32 %v889_v58, %v841_v57  ;;  %v990_v62 = vpop.f32.mrf.mxu1  ;;  %1328 = vmatmul.bf16.gmra.mxu3 %v1055_v59  ;;  %1426 = vmatmul.bf16.gmra.mxu1 %v1055_v59  ;;  %v942_v1 = vadd.f32 %v941_v60, %v2771_v13 }
 0x152   : > { %v1026_v0 = vmax.f32 %v890_v61, 0.0  ;;  %v991_v6 = vadd.f32 %v990_v62, %v942_v1 }
 0x154   : > { %v1054_v2 = vpack.c.bf16 %v1026_v0, %v1024_v63  ;;  %v1029_v11 = vmax.f32 %v991_v6, 0.0 }
 0x155   : > { %v843_v3 = vpop.f32.mrf.mxu2 }
 0x156   : > { %v892_v4 = vpop.f32.mrf.mxu3  ;;  %1279 = vmatmul.bf16.gmra.mxu2 %v1054_v2  ;;  %1377 = vmatmul.bf16.gmra.mxu0 %v1054_v2  ;;  %v844_v9 = vadd.f32 %v843_v3, %v2774_v17 }
 0x157   : > { %v943_v5 = vpop.f32.mrf.mxu0 }
 0x158   : > { %v944_v7 = vadd.f32 %v943_v5, %v2771_v13  ;;  %v992_v8 = vpop.f32.mrf.mxu1  ;;  %v893_v12 = vadd.f32 %v892_v4, %v844_v9  ;;  %v2335_v4 = vld [vmem:[%s2977_s7 + $0x18] sm:$0xff] }
 0x159   : > { %v2343_v5 = vld [vmem:[%s2977_s7 + $0x58] sm:$0xff]  ;;  %1646 = vmatpush.bf16.msra.mxu2 %v2335_v4 }
 0x15a   : > { %v993_v10 = vadd.f32 %v992_v8, %v944_v7  ;;  %v1028_v23 = vmax.f32 %v893_v12, 0.0  ;;  %1695 = vmatpush.bf16.msra.mxu3 %v2343_v5 }
 0x15c   : > { %v1031_v55 = vmax.f32 %v993_v10, 0.0 }
 0x15d   : > { %v845_v56 = vpop.f32.mrf.mxu2 }
 0x15e   : > { %v846_v14 = vadd.f32 %v845_v56, %v2774_v17  ;;  %v894_v15 = vpop.f32.mrf.mxu3  ;;  %v1057_v16 = vpack.c.bf16 %v1031_v55, %v1029_v11 }
 0x15f   : > { %v946_v20 = vpop.f32.mrf.mxu0 }
 0x160   : > { %v895_v21 = vadd.f32 %v894_v15, %v846_v14  ;;  %v995_v22 = vpop.f32.mrf.mxu1  ;;  %1333 = vmatmul.bf16.gmra.mxu3 %v1057_v16  ;;  %1431 = vmatmul.bf16.gmra.mxu1 %v1057_v16  ;;  %v947_v25 = vadd.f32 %v946_v20, %v2771_v13 }
 0x162   : > { %v1030_v24 = vmax.f32 %v895_v21, 0.0  ;;  %v996_v30 = vadd.f32 %v995_v22, %v947_v25 }
 0x164   : > { %v1056_v26 = vpack.c.bf16 %v1030_v24, %v1028_v23  ;;  %v1033_v35 = vmax.f32 %v996_v30, 0.0 }
 0x165   : > { %v848_v27 = vpop.f32.mrf.mxu2 }
 0x166   : > { %v897_v28 = vpop.f32.mrf.mxu3  ;;  %1284 = vmatmul.bf16.gmra.mxu2 %v1056_v26  ;;  %1382 = vmatmul.bf16.gmra.mxu0 %v1056_v26  ;;  %v849_v33 = vadd.f32 %v848_v27, %v2774_v17 }
 0x167   : > { %v948_v29 = vpop.f32.mrf.mxu0 }
 0x168   : > { %v949_v31 = vadd.f32 %v948_v29, %v2771_v13  ;;  %v997_v32 = vpop.f32.mrf.mxu1  ;;  %v898_v38 = vadd.f32 %v897_v28, %v849_v33  ;;  %v2334_v28 = vld [vmem:[%s2977_s7 + $0x10] sm:$0xff] }
 0x169   : > { %v2342_v29 = vld [vmem:[%s2977_s7 + $0x50] sm:$0xff]  ;;  %1647 = vmatpush.bf16.msra.mxu2 %v2334_v28 }
 0x16a   : > { %v998_v34 = vadd.f32 %v997_v32, %v949_v31  ;;  %v1032_v47 = vmax.f32 %v898_v38, 0.0  ;;  %1696 = vmatpush.bf16.msra.mxu3 %v2342_v29 }
 0x16c   : > { %v1035_v36 = vmax.f32 %v998_v34, 0.0 }
 0x16d   : > { %v850_v37 = vpop.f32.mrf.mxu2 }
 0x16e   : > { %v851_v39 = vadd.f32 %v850_v37, %v2774_v17  ;;  %v899_v40 = vpop.f32.mrf.mxu3  ;;  %v1059_v41 = vpack.c.bf16 %v1035_v36, %v1033_v35 }
 0x16f   : > { %v951_v44 = vpop.f32.mrf.mxu0 }
 0x170   : > { %v900_v45 = vadd.f32 %v899_v40, %v851_v39  ;;  %v1000_v46 = vpop.f32.mrf.mxu1  ;;  %1338 = vmatmul.bf16.gmra.mxu3 %v1059_v41  ;;  %1436 = vmatmul.bf16.gmra.mxu1 %v1059_v41  ;;  %v952_v49 = vadd.f32 %v951_v44, %v2771_v13  ;;  %v2333_v39 = vld [vmem:[%s2977_s7 + $0x8] sm:$0xff] }
 0x171   : > { %v2341_v40 = vld [vmem:[%s2977_s7 + $0x48] sm:$0xff]  ;;  %1648 = vmatpush.bf16.msra.mxu2 %v2333_v39 }
 0x172   : > { %v1034_v48 = vmax.f32 %v900_v45, 0.0  ;;  %v1001_v54 = vadd.f32 %v1000_v46, %v952_v49  ;;  %1697 = vmatpush.bf16.msra.mxu3 %v2341_v40 }
 0x174   : > { %v1058_v50 = vpack.c.bf16 %v1034_v48, %v1032_v47  ;;  %v1037_v61 = vmax.f32 %v1001_v54, 0.0 }
 0x175   : > { %v853_v51 = vpop.f32.mrf.mxu2 }
 0x176   : > { %v902_v52 = vpop.f32.mrf.mxu3  ;;  %1289 = vmatmul.bf16.gmra.mxu2 %v1058_v50  ;;  %1387 = vmatmul.bf16.gmra.mxu0 %v1058_v50  ;;  %v854_v59 = vadd.f32 %v853_v51, %v2774_v17 }
 0x177   : > { %v953_v53 = vpop.f32.mrf.mxu0 }
 0x178   : > { %v954_v57 = vadd.f32 %v953_v53, %v2771_v13  ;;  %v1002_v58 = vpop.f32.mrf.mxu1  ;;  %v903_v0 = vadd.f32 %v902_v52, %v854_v59 }
 0x17a   : > { %v1003_v60 = vadd.f32 %v1002_v58, %v954_v57  ;;  %v1036_v9 = vmax.f32 %v903_v0, 0.0 }
 0x17c   : > { %v1039_v62 = vmax.f32 %v1003_v60, 0.0 }
 0x17d   : > { %v855_v63 = vpop.f32.mrf.mxu2 }
 0x17e   : > { %v1061_v1 = vpack.c.bf16 %v1039_v62, %v1037_v61  ;;  %v856_v2 = vadd.f32 %v855_v63, %v2774_v17  ;;  %v904_v3 = vpop.f32.mrf.mxu3 }
 0x17f   : > { %v956_v6 = vpop.f32.mrf.mxu0 }
 0x180   : > { %v905_v7 = vadd.f32 %v904_v3, %v856_v2  ;;  %v1005_v8 = vpop.f32.mrf.mxu1  ;;  %1343 = vmatmul.bf16.gmra.mxu3 %v1061_v1  ;;  %1441 = vmatmul.bf16.gmra.mxu1 %v1061_v1  ;;  %v957_v11 = vadd.f32 %v956_v6, %v2771_v13 }
 0x182   : > { %v1038_v10 = vmax.f32 %v905_v7, 0.0  ;;  %v1006_v15 = vadd.f32 %v1005_v8, %v957_v11 }
 0x184   : > { %v1060_v55 = vpack.c.bf16 %v1038_v10, %v1036_v9  ;;  %v1041_v21 = vmax.f32 %v1006_v15, 0.0 }
 0x185   : > { %v858_v56 = vpop.f32.mrf.mxu2 }
 0x186   : > { %v907_v12 = vpop.f32.mrf.mxu3  ;;  %1294 = vmatmul.bf16.gmra.mxu2 %v1060_v55  ;;  %1392 = vmatmul.bf16.gmra.mxu0 %v1060_v55  ;;  %v859_v19 = vadd.f32 %v858_v56, %v2774_v17  ;;  %v2332_v56 = vld [vmem:[%s2977_s7] sm:$0xff] }
 0x187   : > { %v958_v14 = vpop.f32.mrf.mxu0  ;;  %1649 = vmatpush.bf16.msra.mxu2 %v2332_v56 }
 0x188   : > { %v959_v16 = vadd.f32 %v958_v14, %v2771_v13  ;;  %v1007_v18 = vpop.f32.mrf.mxu1  ;;  %v908_v24 = vadd.f32 %v907_v12, %v859_v19  ;;  %v1100_v19 = vld [vmem:[%s2976_s6] sm:$0x3] }
 0x18a   : > { %v1008_v20 = vadd.f32 %v1007_v18, %v959_v16  ;;  %v1040_v33 = vmax.f32 %v908_v24, 0.0 }
 0x18c   : > { %v1043_v22 = vmax.f32 %v1008_v20, 0.0 }
 0x18d   : > { %v860_v23 = vpop.f32.mrf.mxu2 }
 0x18e   : > { %v1063_v25 = vpack.c.bf16 %v1043_v22, %v1041_v21  ;;  %v861_v26 = vadd.f32 %v860_v23, %v2774_v17  ;;  %v909_v27 = vpop.f32.mrf.mxu3  ;;  %v2858_v22 = vperm.slane %v1100_v19, 1 }
 0x18f   : > { %v961_v30 = vpop.f32.mrf.mxu0 }
 0x190   : > { %v910_v31 = vadd.f32 %v909_v27, %v861_v26  ;;  %v1010_v32 = vpop.f32.mrf.mxu1  ;;  %1348 = vmatmul.bf16.gmra.mxu3 %v1063_v25  ;;  %1446 = vmatmul.bf16.gmra.mxu1 %v1063_v25  ;;  %v962_v35 = vadd.f32 %v961_v30, %v2771_v13  ;;  %v2861_v26 = vperm.slane %v1100_v19, 0 }
 0x192   : > { %v1042_v34 = vmax.f32 %v910_v31, 0.0  ;;  %v1011_v42 = vadd.f32 %v1010_v32, %v962_v35 }
 0x194   : > { %v1062_v36 = vpack.c.bf16 %v1042_v34, %v1040_v33  ;;  %v1045_v47 = vmax.f32 %v1011_v42, 0.0 }
 0x195   : > { %v863_v37 = vpop.f32.mrf.mxu2 }
 0x196   : > { %v912_v38 = vpop.f32.mrf.mxu3  ;;  %1299 = vmatmul.bf16.gmra.mxu2 %v1062_v36  ;;  %1397 = vmatmul.bf16.gmra.mxu0 %v1062_v36  ;;  %v864_v45 = vadd.f32 %v863_v37, %v2774_v17 }
 0x197   : > { %v963_v41 = vpop.f32.mrf.mxu0 }
 0x198   : > { %v964_v43 = vadd.f32 %v963_v41, %v2771_v13  ;;  %v1012_v44 = vpop.f32.mrf.mxu1  ;;  %v913_v50 = vadd.f32 %v912_v38, %v864_v45 }
 0x19a   : > { %v1013_v46 = vadd.f32 %v1012_v44, %v964_v43  ;;  %v1044_v59 = vmax.f32 %v913_v50, 0.0 }
 0x19c   : > { %v1047_v48 = vmax.f32 %v1013_v46, 0.0 }
 0x19d   : > { %v865_v49 = vpop.f32.mrf.mxu2 }
 0x19e   : > { %v1065_v51 = vpack.c.bf16 %v1047_v48, %v1045_v47  ;;  %v866_v52 = vadd.f32 %v865_v49, %v2774_v17  ;;  %v914_v53 = vpop.f32.mrf.mxu3 }
 0x19f   : > { %v966_v54 = vpop.f32.mrf.mxu0 }
 0x1a0   : > { %v915_v57 = vadd.f32 %v914_v53, %v866_v52  ;;  %v1015_v58 = vpop.f32.mrf.mxu1  ;;  %1353 = vmatmul.bf16.gmra.mxu3 %v1065_v51  ;;  %1451 = vmatmul.bf16.gmra.mxu1 %v1065_v51  ;;  %v967_v61 = vadd.f32 %v966_v54, %v2771_v13 }
 0x1a2   : > { %v1046_v60 = vmax.f32 %v915_v57, 0.0  ;;  %v1016_v2 = vadd.f32 %v1015_v58, %v967_v61 }
 0x1a4   : > { %v1064_v62 = vpack.c.bf16 %v1046_v60, %v1044_v59  ;;  %v1049_v7 = vmax.f32 %v1016_v2, 0.0 }
 0x1a5   : > { %v868_v63 = vpop.f32.mrf.mxu2 }
 0x1a6   : > { %v917_v0 = vpop.f32.mrf.mxu3  ;;  %1304 = vmatmul.bf16.gmra.mxu2 %v1064_v62  ;;  %1402 = vmatmul.bf16.gmra.mxu0 %v1064_v62  ;;  %v869_v5 = vadd.f32 %v868_v63, %v2774_v17 }
 0x1a7   : > { %v968_v1 = vpop.f32.mrf.mxu0 }
 0x1a8   : > { %v969_v3 = vadd.f32 %v968_v1, %v2771_v13  ;;  %v1017_v4 = vpop.f32.mrf.mxu1  ;;  %v918_v10 = vadd.f32 %v917_v0, %v869_v5  ;;  %v2340_v13 = vld [vmem:[%s2977_s7 + $0x40] sm:$0xff] }
 0x1a9   : > { %1698 = vmatpush.bf16.msra.mxu3 %v2340_v13 }
 0x1aa   : > { %v1018_v6 = vadd.f32 %v1017_v4, %v969_v3  ;;  %v1048_v15 = vmax.f32 %v918_v10, 0.0 }
 0x1ac   : > { %v1051_v8 = vmax.f32 %v1018_v6, 0.0 }
 0x1ad   : > { %v870_v9 = vpop.f32.mrf.mxu2 }
 0x1ae   : > { %v1067_v11 = vpack.c.bf16 %v1051_v8, %v1049_v7  ;;  %v871_v55 = vadd.f32 %v870_v9, %v2774_v17  ;;  %v919_v12 = vpop.f32.mrf.mxu3 }
 0x1b0   : > { %v920_v14 = vadd.f32 %v919_v12, %v871_v55  ;;  %1358 = vmatmul.bf16.gmra.mxu3 %v1067_v11  ;;  %1456 = vmatmul.bf16.gmra.mxu1 %v1067_v11 }
 0x1b2   : > { %v1050_v16 = vmax.f32 %v920_v14, 0.0 }
 0x1b4   : > { %v1066_v18 = vpack.c.bf16 %v1050_v16, %v1048_v15 }
 0x1b6   : > { %1309 = vmatmul.bf16.gmra.mxu2 %v1066_v18  ;;  %1407 = vmatmul.bf16.gmra.mxu0 %v1066_v18 }
 0x1bd   : > { %v1422_v17 = vpop.f32.mrf.mxu1 }
 0x1c3   : > { %v1324_v20 = vpop.f32.mrf.mxu3  ;;  %v1373_v21 = vpop.f32.mrf.mxu0 }
 0x1c4   : > { %v1374_v24 = vadd.f32 %v1373_v21, %v2858_v22 }
 0x1c5   : > { %v1424_v23 = vpop.f32.mrf.mxu1 }
 0x1c6   : > { %v1423_v29 = vadd.f32 %v1422_v17, %v1374_v24 }
 0x1c8   : > { %v1463_v34 = vmax.f32 %v1423_v29, 0.0 }
 0x1c9   : > { %v1275_v25 = vpop.f32.mrf.mxu2 }
 0x1ca   : > { %v1276_v32 = vadd.f32 %v1275_v25, %v2861_v26 }
 0x1cb   : > { %v1326_v27 = vpop.f32.mrf.mxu3  ;;  %v1375_v28 = vpop.f32.mrf.mxu0 }
 0x1cc   : > { %v1376_v30 = vadd.f32 %v1375_v28, %v2858_v22  ;;  %v1325_v37 = vadd.f32 %v1324_v20, %v1276_v32 }
 0x1cd   : > { %v1427_v31 = vpop.f32.mrf.mxu1 }
 0x1ce   : > { %v1425_v33 = vadd.f32 %v1424_v23, %v1376_v30  ;;  %v1462_v44 = vmax.f32 %v1325_v37, 0.0 }
 0x1d0   : > { %v1465_v35 = vmax.f32 %v1425_v33, 0.0 }
 0x1d1   : > { %v1277_v36 = vpop.f32.mrf.mxu2 }
 0x1d2   : > { %v1495_v38 = vpack.c.bf16 %v1465_v35, %v1463_v34  ;;  %v1278_v39 = vadd.f32 %v1277_v36, %v2861_v26 }
 0x1d3   : > { %v1329_v40 = vpop.f32.mrf.mxu3  ;;  %v1378_v41 = vpop.f32.mrf.mxu0 }
 0x1d4   : > { %v1327_v42 = vadd.f32 %v1326_v27, %v1278_v39  ;;  %1699 = vmatmul.bf16.vlgmr.msra.gmra.mxu3 %v1495_v38  ;;  %v1379_v47 = vadd.f32 %v1378_v41, %v2858_v22 }
 0x1d5   : > { %v1429_v43 = vpop.f32.mrf.mxu1 }
 0x1d6   : > { %v1464_v45 = vmax.f32 %v1327_v42, 0.0  ;;  %v1428_v51 = vadd.f32 %v1427_v31, %v1379_v47 }
 0x1d8   : > { %v1494_v46 = vpack.c.bf16 %v1464_v45, %v1462_v44  ;;  %v1467_v58 = vmax.f32 %v1428_v51, 0.0 }
 0x1d9   : > { %v1280_v48 = vpop.f32.mrf.mxu2 }
 0x1da   : > { %1650 = vmatmul.bf16.vlgmr.msra.gmra.mxu2 %v1494_v46  ;;  %v1281_v54 = vadd.f32 %v1280_v48, %v2861_v26 }
 0x1db   : > { %v1331_v49 = vpop.f32.mrf.mxu3  ;;  %v1380_v50 = vpop.f32.mrf.mxu0 }
 0x1dc   : > { %v1381_v52 = vadd.f32 %v1380_v50, %v2858_v22  ;;  %v1330_v61 = vadd.f32 %v1329_v40, %v1281_v54 }
 0x1dd   : > { %v1432_v53 = vpop.f32.mrf.mxu1 }
 0x1de   : > { %v1430_v57 = vadd.f32 %v1429_v43, %v1381_v52  ;;  %v1466_v4 = vmax.f32 %v1330_v61, 0.0 }
 0x1e0   : > { %v1469_v59 = vmax.f32 %v1430_v57, 0.0 }
 0x1e1   : > { %v1282_v60 = vpop.f32.mrf.mxu2 }
 0x1e2   : > { %v1283_v62 = vadd.f32 %v1282_v60, %v2861_v26  ;;  %v1497_v63 = vpack.c.bf16 %v1469_v59, %v1467_v58 }
 0x1e3   : > { %v1334_v0 = vpop.f32.mrf.mxu3  ;;  %v1383_v1 = vpop.f32.mrf.mxu0 }
 0x1e4   : > { %v1332_v2 = vadd.f32 %v1331_v49, %v1283_v62  ;;  %1704 = vmatmul.bf16.gmra.mxu3 %v1497_v63  ;;  %v1384_v6 = vadd.f32 %v1383_v1, %v2858_v22 }
 0x1e5   : > { %v1434_v3 = vpop.f32.mrf.mxu1 }
 0x1e6   : > { %v1468_v5 = vmax.f32 %v1332_v2, 0.0  ;;  %v1433_v11 = vadd.f32 %v1432_v53, %v1384_v6 }
 0x1e8   : > { %v1496_v7 = vpack.c.bf16 %v1468_v5, %v1466_v4  ;;  %v1471_v13 = vmax.f32 %v1433_v11, 0.0 }
 0x1e9   : > { %v1285_v8 = vpop.f32.mrf.mxu2 }
 0x1ea   : > { %1655 = vmatmul.bf16.gmra.mxu2 %v1496_v7  ;;  %v1286_v12 = vadd.f32 %v1285_v8, %v2861_v26 }
 0x1eb   : > { %v1336_v9 = vpop.f32.mrf.mxu3  ;;  %v1385_v10 = vpop.f32.mrf.mxu0 }
 0x1ec   : > { %v1386_v55 = vadd.f32 %v1385_v10, %v2858_v22  ;;  %v1335_v18 = vadd.f32 %v1334_v0, %v1286_v12 }
 0x1ed   : > { %v1437_v56 = vpop.f32.mrf.mxu1 }
 0x1ee   : > { %v1435_v14 = vadd.f32 %v1434_v3, %v1386_v55  ;;  %v1470_v25 = vmax.f32 %v1335_v18, 0.0 }
 0x1f0   : > { %v1473_v15 = vmax.f32 %v1435_v14, 0.0 }
 0x1f1   : > { %v1287_v16 = vpop.f32.mrf.mxu2 }
 0x1f2   : > { %v1288_v17 = vadd.f32 %v1287_v16, %v2861_v26  ;;  %v1499_v19 = vpack.c.bf16 %v1473_v15, %v1471_v13 }
 0x1f3   : > { %v1339_v20 = vpop.f32.mrf.mxu3  ;;  %v1388_v21 = vpop.f32.mrf.mxu0 }
 0x1f4   : > { %v1337_v23 = vadd.f32 %v1336_v9, %v1288_v17  ;;  %1709 = vmatmul.bf16.gmra.mxu3 %v1499_v19  ;;  %v1389_v28 = vadd.f32 %v1388_v21, %v2858_v22 }
 0x1f5   : > { %v1439_v24 = vpop.f32.mrf.mxu1 }
 0x1f6   : > { %v1472_v27 = vmax.f32 %v1337_v23, 0.0  ;;  %v1438_v33 = vadd.f32 %v1437_v56, %v1389_v28 }
 0x1f8   : > { %v1498_v29 = vpack.c.bf16 %v1472_v27, %v1470_v25  ;;  %v1475_v38 = vmax.f32 %v1438_v33, 0.0 }
 0x1f9   : > { %v1290_v30 = vpop.f32.mrf.mxu2 }
 0x1fa   : > { %1660 = vmatmul.bf16.gmra.mxu2 %v1498_v29  ;;  %v1291_v36 = vadd.f32 %v1290_v30, %v2861_v26 }
 0x1fb   : > { %v1341_v31 = vpop.f32.mrf.mxu3  ;;  %v1390_v32 = vpop.f32.mrf.mxu0 }
 0x1fc   : > { %v1391_v34 = vadd.f32 %v1390_v32, %v2858_v22  ;;  %v1340_v41 = vadd.f32 %v1339_v20, %v1291_v36 }
 0x1fd   : > { %v1442_v35 = vpop.f32.mrf.mxu1 }
 0x1fe   : > { %v1440_v37 = vadd.f32 %v1439_v24, %v1391_v34  ;;  %v1474_v48 = vmax.f32 %v1340_v41, 0.0 }
 0x200   : > { %v1477_v39 = vmax.f32 %v1440_v37, 0.0 }
 0x201   : > { %v1292_v40 = vpop.f32.mrf.mxu2 }
 0x202   : > { %v1293_v42 = vadd.f32 %v1292_v40, %v2861_v26  ;;  %v1501_v43 = vpack.c.bf16 %v1477_v39, %v1475_v38 }
 0x203   : > { %v1344_v44 = vpop.f32.mrf.mxu3  ;;  %v1393_v45 = vpop.f32.mrf.mxu0 }
 0x204   : > { %v1342_v46 = vadd.f32 %v1341_v31, %v1293_v42  ;;  %1714 = vmatmul.bf16.gmra.mxu3 %v1501_v43  ;;  %v1394_v50 = vadd.f32 %v1393_v45, %v2858_v22 }
 0x205   : > { %v1444_v47 = vpop.f32.mrf.mxu1 }
 0x206   : > { %v1476_v49 = vmax.f32 %v1342_v46, 0.0  ;;  %v1443_v57 = vadd.f32 %v1442_v35, %v1394_v50 }
 0x208   : > { %v1500_v51 = vpack.c.bf16 %v1476_v49, %v1474_v48  ;;  %v1479_v62 = vmax.f32 %v1443_v57, 0.0 }
 0x209   : > { %v1295_v52 = vpop.f32.mrf.mxu2 }
 0x20a   : > { %1665 = vmatmul.bf16.gmra.mxu2 %v1500_v51  ;;  %v1296_v60 = vadd.f32 %v1295_v52, %v2861_v26 }
 0x20b   : > { %v1346_v53 = vpop.f32.mrf.mxu3  ;;  %v1395_v54 = vpop.f32.mrf.mxu0 }
 0x20c   : > { %v1396_v58 = vadd.f32 %v1395_v54, %v2858_v22  ;;  %v1345_v1 = vadd.f32 %v1344_v44, %v1296_v60 }
 0x20d   : > { %v1447_v59 = vpop.f32.mrf.mxu1 }
 0x20e   : > { %v1445_v61 = vadd.f32 %v1444_v47, %v1396_v58  ;;  %v1478_v8 = vmax.f32 %v1345_v1, 0.0 }
 0x210   : > { %v1481_v63 = vmax.f32 %v1445_v61, 0.0 }
 0x211   : > { %v1297_v0 = vpop.f32.mrf.mxu2 }
 0x212   : > { %v1298_v2 = vadd.f32 %v1297_v0, %v2861_v26  ;;  %v1503_v3 = vpack.c.bf16 %v1481_v63, %v1479_v62 }
 0x213   : > { %v1349_v4 = vpop.f32.mrf.mxu3  ;;  %v1398_v5 = vpop.f32.mrf.mxu0 }
 0x214   : > { %v1347_v6 = vadd.f32 %v1346_v53, %v1298_v2  ;;  %1719 = vmatmul.bf16.gmra.mxu3 %v1503_v3  ;;  %v1399_v10 = vadd.f32 %v1398_v5, %v2858_v22 }
 0x215   : > { %v1449_v7 = vpop.f32.mrf.mxu1 }
 0x216   : > { %v1480_v9 = vmax.f32 %v1347_v6, 0.0  ;;  %v1448_v14 = vadd.f32 %v1447_v59, %v1399_v10 }
 0x218   : > { %v1502_v11 = vpack.c.bf16 %v1480_v9, %v1478_v8  ;;  %v1483_v17 = vmax.f32 %v1448_v14, 0.0 }
 0x219   : > { %v1300_v55 = vpop.f32.mrf.mxu2 }
 0x21a   : > { %1670 = vmatmul.bf16.gmra.mxu2 %v1502_v11  ;;  %v1301_v15 = vadd.f32 %v1300_v55, %v2861_v26  ;;  %v2898_v11 = vld [vmem:[%s2978_s8] ss:$0 sm:$0xff] }
 0x21b   : > { %v1351_v56 = vpop.f32.mrf.mxu3  ;;  %v1400_v12 = vpop.f32.mrf.mxu0 }
 0x21c   : > { %v1401_v13 = vadd.f32 %v1400_v12, %v2858_v22  ;;  %v1350_v21 = vadd.f32 %v1349_v4, %v1301_v15 }
 0x21d   : > { %v1452_v18 = vpop.f32.mrf.mxu1 }
 0x21e   : > { %v1450_v16 = vadd.f32 %v1449_v7, %v1401_v13  ;;  %v1482_v29 = vmax.f32 %v1350_v21, 0.0 }
 0x220   : > { %v1485_v19 = vmax.f32 %v1450_v16, 0.0 }
 0x221   : > { %v1302_v20 = vpop.f32.mrf.mxu2 }
 0x222   : > { %v1303_v23 = vadd.f32 %v1302_v20, %v2861_v26  ;;  %v1505_v24 = vpack.c.bf16 %v1485_v19, %v1483_v17 }
 0x223   : > { %v1403_v25 = vpop.f32.mrf.mxu0  ;;  %v1354_v28 = vpop.f32.mrf.mxu3 }
 0x224   : > { %v1352_v27 = vadd.f32 %v1351_v56, %v1303_v23  ;;  %1724 = vmatmul.bf16.gmra.mxu3 %v1505_v24  ;;  %v1404_v31 = vadd.f32 %v1403_v25, %v2858_v22 }
 0x225   : > { %v1454_v33 = vpop.f32.mrf.mxu1 }
 0x226   : > { %v1484_v30 = vmax.f32 %v1352_v27, 0.0  ;;  %v1453_v36 = vadd.f32 %v1452_v18, %v1404_v31 }
 0x228   : > { %v1504_v32 = vpack.c.bf16 %v1484_v30, %v1482_v29  ;;  %v1487_v41 = vmax.f32 %v1453_v36, 0.0 }
 0x229   : > { %v1305_v34 = vpop.f32.mrf.mxu2 }
 0x22a   : > { %1675 = vmatmul.bf16.gmra.mxu2 %v1504_v32  ;;  %v1306_v38 = vadd.f32 %v1305_v34, %v2861_v26 }
 0x22b   : > { %v1405_v35 = vpop.f32.mrf.mxu0  ;;  %v1356_v40 = vpop.f32.mrf.mxu3 }
 0x22c   : > { %v1406_v37 = vadd.f32 %v1405_v35, %v2858_v22  ;;  %v1355_v44 = vadd.f32 %v1354_v28, %v1306_v38 }
 0x22d   : > { %v1457_v47 = vpop.f32.mrf.mxu1 }
 0x22e   : > { %v1455_v39 = vadd.f32 %v1454_v33, %v1406_v37  ;;  %v1486_v50 = vmax.f32 %v1355_v44, 0.0 }
 0x230   : > { %v1489_v42 = vmax.f32 %v1455_v39, 0.0 }
 0x231   : > { %v1307_v43 = vpop.f32.mrf.mxu2 }
 0x232   : > { %v1308_v45 = vadd.f32 %v1307_v43, %v2861_v26  ;;  %v1507_v46 = vpack.c.bf16 %v1489_v42, %v1487_v41 }
 0x233   : > { %v1408_v48 = vpop.f32.mrf.mxu0  ;;  %v1359_v54 = vpop.f32.mrf.mxu3 }
 0x234   : > { %v1357_v49 = vadd.f32 %v1356_v40, %v1308_v45  ;;  %1729 = vmatmul.bf16.gmra.mxu3 %v1507_v46  ;;  %v1409_v52 = vadd.f32 %v1408_v48, %v2858_v22 }
 0x235   : > { %v1459_v61 = vpop.f32.mrf.mxu1 }
 0x236   : > { %v1488_v51 = vmax.f32 %v1357_v49, 0.0  ;;  %v1458_v59 = vadd.f32 %v1457_v47, %v1409_v52 }
 0x238   : > { %v1506_v53 = vpack.c.bf16 %v1488_v51, %v1486_v50  ;;  %v1491_v0 = vmax.f32 %v1458_v59, 0.0 }
 0x239   : > { %v1310_v57 = vpop.f32.mrf.mxu2 }
 0x23a   : > { %1680 = vmatmul.bf16.gmra.mxu2 %v1506_v53  ;;  %v1311_v62 = vadd.f32 %v1310_v57, %v2861_v26 }
 0x23b   : > { %v1410_v58 = vpop.f32.mrf.mxu0  ;;  %v1361_v6 = vpop.f32.mrf.mxu3 }
 0x23c   : > { %v1411_v60 = vadd.f32 %v1410_v58, %v2858_v22  ;;  %v1360_v3 = vadd.f32 %v1359_v54, %v1311_v62 }
 0x23e   : > { %v1460_v63 = vadd.f32 %v1459_v61, %v1411_v60  ;;  %v1490_v8 = vmax.f32 %v1360_v3, 0.0 }
 0x240   : > { %v1493_v1 = vmax.f32 %v1460_v63, 0.0 }
 0x241   : > { %v1312_v2 = vpop.f32.mrf.mxu2 }
 0x242   : > { %v1313_v4 = vadd.f32 %v1312_v2, %v2861_v26  ;;  %v1509_v5 = vpack.c.bf16 %v1493_v1, %v1491_v0 }
 0x244   : > { %v1362_v7 = vadd.f32 %v1361_v6, %v1313_v4  ;;  %1734 = vmatmul.bf16.gmra.mxu3 %v1509_v5 }
 0x246   : > { %v1492_v9 = vmax.f32 %v1362_v7, 0.0 }
 0x248   : > { %v1508_v10 = vpack.c.bf16 %v1492_v9, %v1490_v8 }
 0x24a   : > { %1685 = vmatmul.bf16.gmra.mxu2 %v1508_v10 }
 0x257   : > { %v1700_v22 = vpop.f32.mrf.mxu3 }
 0x25d   : > { %v1651_v55 = vpop.f32.mrf.mxu2 }
 0x25e   : > { %v1652_v26 = vadd.f32 %v2898_v11, %v1651_v55 }
 0x25f   : > { %v1702_v56 = vpop.f32.mrf.mxu3 }
 0x260   : > { %v1701_v12 = vadd.f32 %v1700_v22, %v1652_v26 }
 0x262   : > { %1740 = vst [vmem:[%s2903_s26] sm:$0xff] %v1701_v12 }
 0x265   : > { %v1653_v14 = vpop.f32.mrf.mxu2 }
 0x266   : > { %v1654_v13 = vadd.f32 %v2898_v11, %v1653_v14 }
 0x267   : > { %v1705_v15 = vpop.f32.mrf.mxu3 }
 0x268   : > { %v1703_v16 = vadd.f32 %v1702_v56, %v1654_v13 }
 0x26a   : > { %1741 = vst [vmem:[%s2903_s26 + $0x8] sm:$0xff] %v1703_v16 }
 0x26d   : > { %v1656_v18 = vpop.f32.mrf.mxu2 }
 0x26e   : > { %v1657_v17 = vadd.f32 %v2898_v11, %v1656_v18 }
 0x26f   : > { %v1707_v19 = vpop.f32.mrf.mxu3 }
 0x270   : > { %v1706_v20 = vadd.f32 %v1705_v15, %v1657_v17 }
 0x272   : > { %1742 = vst [vmem:[%s2903_s26 + $0x10] sm:$0xff] %v1706_v20 }
 0x275   : > { %v1658_v21 = vpop.f32.mrf.mxu2 }
 0x276   : > { %v1659_v23 = vadd.f32 %v2898_v11, %v1658_v21 }
 0x277   : > { %v1710_v24 = vpop.f32.mrf.mxu3 }
 0x278   : > { %v1708_v25 = vadd.f32 %v1707_v19, %v1659_v23 }
 0x27a   : > { %1743 = vst [vmem:[%s2903_s26 + $0x18] sm:$0xff] %v1708_v25 }
 0x27d   : > { %v1661_v27 = vpop.f32.mrf.mxu2 }
 0x27e   : > { %v1662_v28 = vadd.f32 %v2898_v11, %v1661_v27 }
 0x27f   : > { %v1712_v29 = vpop.f32.mrf.mxu3 }
 0x280   : > { %v1711_v30 = vadd.f32 %v1710_v24, %v1662_v28 }
 0x282   : > { %1744 = vst [vmem:[%s2903_s26 + $0x20] sm:$0xff] %v1711_v30 }
 0x285   : > { %v1663_v31 = vpop.f32.mrf.mxu2 }
 0x286   : > { %v1664_v32 = vadd.f32 %v2898_v11, %v1663_v31 }
 0x287   : > { %v1715_v33 = vpop.f32.mrf.mxu3 }
 0x288   : > { %v1713_v34 = vadd.f32 %v1712_v29, %v1664_v32 }
 0x28a   : > { %1745 = vst [vmem:[%s2903_s26 + $0x28] sm:$0xff] %v1713_v34 }
 0x28d   : > { %v1666_v35 = vpop.f32.mrf.mxu2 }
 0x28e   : > { %v1667_v36 = vadd.f32 %v2898_v11, %v1666_v35 }
 0x28f   : > { %v1717_v37 = vpop.f32.mrf.mxu3 }
 0x290   : > { %v1716_v38 = vadd.f32 %v1715_v33, %v1667_v36 }
 0x292   : > { %1746 = vst [vmem:[%s2903_s26 + $0x30] sm:$0xff] %v1716_v38 }
 0x295   : > { %v1668_v39 = vpop.f32.mrf.mxu2 }
 0x296   : > { %v1669_v40 = vadd.f32 %v2898_v11, %v1668_v39 }
 0x297   : > { %v1720_v41 = vpop.f32.mrf.mxu3 }
 0x298   : > { %v1718_v42 = vadd.f32 %v1717_v37, %v1669_v40 }
 0x29a   : > { %1747 = vst [vmem:[%s2903_s26 + $0x38] sm:$0xff] %v1718_v42 }
 0x29d   : > { %v1671_v43 = vpop.f32.mrf.mxu2 }
 0x29e   : > { %v1672_v44 = vadd.f32 %v2898_v11, %v1671_v43 }
 0x29f   : > { %v1722_v45 = vpop.f32.mrf.mxu3 }
 0x2a0   : > { %v1721_v46 = vadd.f32 %v1720_v41, %v1672_v44 }
 0x2a2   : > { %1748 = vst [vmem:[%s2903_s26 + $0x40] sm:$0xff] %v1721_v46 }
 0x2a5   : > { %v1673_v47 = vpop.f32.mrf.mxu2 }
 0x2a6   : > { %v1674_v48 = vadd.f32 %v2898_v11, %v1673_v47 }
 0x2a7   : > { %v1725_v49 = vpop.f32.mrf.mxu3 }
 0x2a8   : > { %v1723_v50 = vadd.f32 %v1722_v45, %v1674_v48 }
 0x2aa   : > { %1749 = vst [vmem:[%s2903_s26 + $0x48] sm:$0xff] %v1723_v50 }
 0x2ad   : > { %v1676_v51 = vpop.f32.mrf.mxu2 }
 0x2ae   : > { %v1677_v52 = vadd.f32 %v2898_v11, %v1676_v51 }
 0x2af   : > { %v1727_v53 = vpop.f32.mrf.mxu3 }
 0x2b0   : > { %v1726_v54 = vadd.f32 %v1725_v49, %v1677_v52 }
 0x2b2   : > { %1750 = vst [vmem:[%s2903_s26 + $0x50] sm:$0xff] %v1726_v54 }
 0x2b5   : > { %v1678_v57 = vpop.f32.mrf.mxu2 }
 0x2b6   : > { %v1679_v58 = vadd.f32 %v2898_v11, %v1678_v57 }
 0x2b7   : > { %v1730_v60 = vpop.f32.mrf.mxu3 }
 0x2b8   : > { %v1728_v59 = vadd.f32 %v1727_v53, %v1679_v58 }
 0x2ba   : > { %1751 = vst [vmem:[%s2903_s26 + $0x58] sm:$0xff] %v1728_v59 }
 0x2bd   : > { %v1681_v61 = vpop.f32.mrf.mxu2 }
 0x2be   : > { %v1682_v62 = vadd.f32 %v2898_v11, %v1681_v61 }
 0x2bf   : > { %v1732_v0 = vpop.f32.mrf.mxu3 }
 0x2c0   : > { %v1731_v63 = vadd.f32 %v1730_v60, %v1682_v62 }
 0x2c2   : > { %1752 = vst [vmem:[%s2903_s26 + $0x60] sm:$0xff] %v1731_v63 }
 0x2c5   : > { %v1683_v1 = vpop.f32.mrf.mxu2 }
 0x2c6   : > { %v1684_v2 = vadd.f32 %v2898_v11, %v1683_v1 }
 0x2c7   : > { %v1735_v4 = vpop.f32.mrf.mxu3 }
 0x2c8   : > { %v1733_v3 = vadd.f32 %v1732_v0, %v1684_v2 }
 0x2ca   : > { %1753 = vst [vmem:[%s2903_s26 + $0x68] sm:$0xff] %v1733_v3 }
 0x2cd   : > { %v1686_v5 = vpop.f32.mrf.mxu2 }
 0x2ce   : > { %v1687_v6 = vadd.f32 %v2898_v11, %v1686_v5 }
 0x2cf   : > { %v1737_v10 = vpop.f32.mrf.mxu3 }
 0x2d0   : > { %v1736_v7 = vadd.f32 %v1735_v4, %v1687_v6 }
 0x2d2   : > { %1754 = vst [vmem:[%s2903_s26 + $0x70] sm:$0xff] %v1736_v7 }
 0x2d5   : > { %v1688_v8 = vpop.f32.mrf.mxu2 }
 0x2d6   : > { %v1689_v9 = vadd.f32 %v2898_v11, %v1688_v8 }
 0x2d8   : > { %v1738_v22 = vadd.f32 %v1737_v10, %v1689_v9 }
 0x2da   : > { %1755 = vst [vmem:[%s2903_s26 + $0x78] sm:$0xff] %v1738_v22 }
 0x2db   : > { %2501 = shalt.err (!%p2498_p8)
}
 0x2dc   : > { %s2550_s22 = smov 128   ;;  %s2551_s26 = smov 8  }
 0x2dd   : > { %2357 = dma.vmem_to_hbm [thread:$0]  (%p2640_p5), %s1770_s16, 2048, %s1772_s24, %s1757_s17, %s2550_s22, %s2550_s22, %s2551_s26  }
 0x2de PF: > { %p2374_p9 = scmp.ge.s32.totalorder %s2544_s12, 2  ;;  %s1786_s14 = sand.u32 1, %s2532_s30  }
 0x2df   : > { %s1787_s25 = scalar_lea.sflag [#allocation4], %s1786_s14 }
 0x2e0   : > { %p2367_p10 = pnand %p2374_p9, %p2644_p6 }
 0x2e2   : > { %p2368_p11 = pneg %p2367_p10 }
 0x2e4   : > { %2527 = dma.done.wait (%p2368_p11), %s1787_s25, 2048  }
 0x2e5   : > { %2529 = vsyncadd (%p2368_p11), %s1787_s25, 4294965248  ;;  %p21_p12 = scmp.ge.s32.totalorder %s2627_s15, 4   ;;  %s2983_s30 = smov %s2536_s10 }
 0x2e6   : > { %s2984_s10 = smov %s2540_s11  ;;  %s2985_s11 = smov %s2638_s18 }
 0x2e7   : > { %s2986_s12 = smov %s2627_s15  ;;  %23 = sbr.rel (!%p21_p12) target bundleno = 5 (0x5), region = 100 }
 0x2ec   :  { %1793 = vsyncpa [#allocation3], 1 }
 0x2ed   :  { %1795 = vsyncpa [#allocation3 + $0x1], 1 }
 0x2ee   :  { %1796 = vsyncpa [#allocation6], 1 }
 0x2ef   :  { %1797 = vsyncpa [#allocation4], 1 }
 0x2f0   :  { %1799 = vsyncpa [#allocation4 + $0x1], 1 }

</bundles_post_ra>
